<compile_context>
chip_gen: v6e
topology: v6e:2x2x1
jax: 0.10.0
libtpu: 0.0.40
codegen_flags: <defaults>
</compile_context>

<pallas_src>
import jax
import jax.numpy as jnp
from jax import lax
from jax.experimental import pallas as pl
from jax.experimental.pallas import tpu as pltpu


# ----------------------------- fused gcn kernel ---------------------------- #

def _make_gcn_kernel(S2, S3, order):
    """Build the fused kernel for S2 shared (V,V) supports and S3 per-sample
    (N,V,V) supports, `order` hops each.  All loops unroll at trace time."""

    def kernel(*refs):
        i = 0
        x_ref = refs[i]; i += 1                       # (1, V, C*L)
        if S2 > 0:
            a2_ref = refs[i]; i += 1                  # (S2, V, V)
        else:
            a2_ref = None
        if S3 > 0:
            a3_ref = refs[i]; i += 1                  # (S3, 1, V, V)
        else:
            a3_ref = None
        wk_ref = refs[i]                              # (K, C*L, Cout*L)
        b_ref = refs[i + 1]                           # (1, Cout*L)
        o_ref = refs[i + 2]                           # (1, V, Cout*L)

        x0 = x_ref[0]                                 # (V, C*L)

        # Hop 0 (the identity block of the concat) feeds the fused MLP directly.
        acc = jnp.dot(x0, wk_ref[0], preferred_element_type=jnp.float32)

        hop = 1

        def chain(a, acc, hop):
            # x1[w, cl] = sum_v a[v, w] * x0[v, cl]  -> one lane-dense MXU matmul.
            x1 = lax.dot_general(a, x0, (((0,), (0,)), ((), ())),
                                 preferred_element_type=jnp.float32)
            acc = acc + jnp.dot(x1, wk_ref[hop],
                                preferred_element_type=jnp.float32)
            hop += 1
            for _ in range(2, order + 1):
                x1 = lax.dot_general(a, x1, (((0,), (0,)), ((), ())),
                                     preferred_element_type=jnp.float32)
                acc = acc + jnp.dot(x1, wk_ref[hop],
                                    preferred_element_type=jnp.float32)
                hop += 1
            return acc, hop

        for s in range(S2):
            acc, hop = chain(a2_ref[s], acc, hop)
        for s in range(S3):
            acc, hop = chain(a3_ref[s, 0], acc, hop)

        acc = acc + b_ref[...]                        # bias row, broadcast over V
        o_ref[0] = acc.astype(o_ref.dtype)

    return kernel


def gcn_forward(x, supports, mlp_weight, mlp_bias, order=2):
    """Fused forward pass of the DFDGCN `gcn` module (inference).

    x: (N, C, V, L); supports: list of (V, V) and/or (N, V, V) adjacencies;
    mlp_weight: (Cout, (order*len(supports)+1)*C); mlp_bias: (Cout,).
    Returns (N, Cout, V, L).
    """
    N, C, V, L = x.shape
    CL = C * L
    Cout = mlp_weight.shape[0]
    CoutL = Cout * L

    # Split supports by rank, remembering original positions so the per-hop weight
    # slices stay aligned with the PyTorch concat order.
    dims_bad = [a.ndim for a in supports if a.ndim not in (2, 3)]
    if dims_bad:
        raise NotImplementedError(
            'DFDGCN not implemented for A of dimension ' + str(dims_bad[0]))
    idx2 = [i for i, a in enumerate(supports) if a.ndim == 2]
    idx3 = [i for i, a in enumerate(supports) if a.ndim == 3]
    S2, S3 = len(idx2), len(idx3)
    S = S2 + S3
    K = S * order + 1
    assert mlp_weight.shape[1] == K * C, "mlp weight does not match support/order"

    # Lane-dense activation layout: (N, C, V, L) -> (N, V, C*L).  Single transpose in.
    xr = jnp.transpose(x, (0, 2, 1, 3)).reshape(N, V, CL)

    # Original hop index (position in PyTorch's `out` list) for each hop in kernel
    # support order (all shared supports first, then per-sample ones).
    hop_orig = [0]
    for s in idx2 + idx3:
        for o in range(order):
            hop_orig.append(1 + s * order + o)

    # Kronecker-expanded MLP weights: kron(W_k^T, I_L) turns the channel contraction
    # into a plain (V, C*L) @ (C*L, Cout*L) matmul in the hop layout — no concat, no
    # per-hop transposes.  (Tiny here; for very large L tile the lane dim instead.)
    eye_l = jnp.eye(L, dtype=mlp_weight.dtype)
    wkron = jnp.stack([
        jnp.kron(mlp_weight[:, k * C:(k + 1) * C].T, eye_l) for k in hop_orig
    ])                                                        # (K, C*L, Cout*L)

    bias_row = jnp.repeat(mlp_bias, L).reshape(1, CoutL)      # bias[co] at co*L + l

    operands = [xr]
    in_specs = [pl.BlockSpec((1, V, CL), lambda n: (n, 0, 0))]
    if S2 > 0:
        a2 = jnp.stack([supports[i] for i in idx2])           # (S2, V, V), shared
        operands.append(a2)
        in_specs.append(pl.BlockSpec((S2, V, V), lambda n: (0, 0, 0)))
    if S3 > 0:
        a3 = jnp.stack([supports[i] for i in idx3])           # (S3, N, V, V)
        operands.append(a3)
        in_specs.append(pl.BlockSpec((S3, 1, V, V), lambda n: (0, n, 0, 0)))
    operands += [wkron, bias_row]
    in_specs += [
        pl.BlockSpec((K, CL, CoutL), lambda n: (0, 0, 0)),
        pl.BlockSpec((1, CoutL), lambda n: (0, 0)),
    ]

    itemsize = jnp.dtype(x.dtype).itemsize
    flops = 2 * N * S * order * V * V * CL + 2 * N * K * V * CL * CoutL
    bytes_accessed = (xr.size + (S2 * V * V) + (S3 * N * V * V)
                      + wkron.size + bias_row.size + N * V * CoutL) * itemsize
    cost = pl.CostEstimate(flops=flops, transcendentals=0,
                           bytes_accessed=bytes_accessed)

    out_t = pl.pallas_call(
        _make_gcn_kernel(S2, S3, order),
        out_shape=jax.ShapeDtypeStruct((N, V, CoutL), x.dtype),
        grid_spec=pltpu.PrefetchScalarGridSpec(
            num_scalar_prefetch=0,
            grid=(N,),                                 # >=2 steps: both v7x TCs busy
            in_specs=in_specs,
            out_specs=pl.BlockSpec((1, V, CoutL), lambda n: (n, 0, 0)),
        ),
        compiler_params=pltpu.CompilerParams(
            dimension_semantics=("parallel",),
            vmem_limit_bytes=32 * 1024 * 1024,         # safe on v5e/v6e/v7x
        ),
        cost_estimate=cost,
    )(*operands)

    # Single layout change out: (N, V, Cout*L) -> (N, Cout, V, L).
    h = jnp.transpose(out_t.reshape(N, V, Cout, L), (0, 2, 1, 3))
    # TODO(synk): F.dropout is identity at inference (training=False); training-mode
    # dropout (pltpu.stateful_bernoulli in the epilogue) intentionally not applied.
    return h


# -------------------------------- reference -------------------------------- #

def _gcn_ref(x, supports, w, b, order=2):
    def nconv_ref(xx, A):
        if A.ndim == 2:
            return jnp.einsum('ncvl,vw->ncwl', xx, A)
        return jnp.einsum('ncvl,nvw->ncwl', xx, A)
    out = [x]
    for a in supports:
        x1 = nconv_ref(x, a)
        out.append(x1)
        for _ in range(2, order + 1):
            x2 = nconv_ref(x1, a)
            out.append(x2)
            x1 = x2
    h = jnp.concatenate(out, axis=1)
    return jnp.einsum('oc,ncvl->novl', w, h) + b[None, :, None, None]


if __name__ == "__main__":
    key = jax.random.PRNGKey(0)
    ks = jax.random.split(key, 7)

    # Small shapes: batch=2, channels=4, V=16 nodes, L=32 steps -> C*L = 128 lanes.
    N, C_IN, C_OUT, V, L = 2, 4, 8, 16, 32
    ORDER, SUPPORT_LEN = 2, 3

    x = jax.random.normal(ks[0], (N, C_IN, V, L), dtype=jnp.float32)
    # 3 static adjacencies + 1 data-driven per-sample adjacency (support_len + 1 total,
    # matching gcn.__init__'s channel formula (order*(support_len+1)+1)*c_in).
    supports = [
        jax.random.normal(ks[1], (V, V), dtype=jnp.float32) * 0.25,
        jax.random.normal(ks[2], (V, V), dtype=jnp.float32) * 0.25,
        jax.random.normal(ks[3], (V, V), dtype=jnp.float32) * 0.25,
        jax.random.normal(ks[4], (N, V, V), dtype=jnp.float32) * 0.25,
    ]
    c_in_mlp = (ORDER * (SUPPORT_LEN + 1) + 1) * C_IN
    mlp_w = jax.random.normal(ks[5], (C_OUT, c_in_mlp), dtype=jnp.float32) * 0.1
    mlp_b = jax.random.normal(ks[6], (C_OUT,), dtype=jnp.float32)

    gcn_jit = jax.jit(gcn_forward, static_argnames=("order",))

    h = jax.block_until_ready(gcn_jit(x, supports, mlp_w, mlp_b, order=ORDER))
    h_ref = _gcn_ref(x, supports, mlp_w, mlp_b, order=ORDER)

    assert h.shape == (N, C_OUT, V, L)
    assert jnp.allclose(h, h_ref, atol=1e-3, rtol=1e-3), \
        float(jnp.max(jnp.abs(h - h_ref)))

    print("KERNEL_OK")
</pallas_src>

<mosaic_0001>
module attributes {stable_mosaic.version = 11 : i64} {
  func.func @kernel(%arg0: i32, %arg1: memref<1x16x128xf32, #tpu.memory_space<vmem>>, %arg2: memref<3x16x16xf32, #tpu.memory_space<vmem>>, %arg3: memref<1x1x16x16xf32, #tpu.memory_space<vmem>>, %arg4: memref<9x128x256xf32, #tpu.memory_space<vmem>>, %arg5: memref<1x256xf32, #tpu.memory_space<vmem>>, %arg6: memref<1x16x256xf32, #tpu.memory_space<vmem>>) attributes {dimension_semantics = [#tpu.dimension_semantics<parallel>], iteration_bounds = array<i64: 2>, scalar_prefetch = 0 : i64, scratch_operands = 0 : i64, tpu.core_type = #tpu.core_type<tc>, window_params = [{transform_indices = @transform_0, window_bounds = array<i64: 1, 16, 128>}, {pipeline_mode = #tpu.pipeline_mode<synchronous>, transform_indices = @transform_1, window_bounds = array<i64: 3, 16, 16>}, {transform_indices = @transform_2, window_bounds = array<i64: 1, 1, 16, 16>}, {pipeline_mode = #tpu.pipeline_mode<synchronous>, transform_indices = @transform_3, window_bounds = array<i64: 9, 128, 256>}, {pipeline_mode = #tpu.pipeline_mode<synchronous>, transform_indices = @transform_4, window_bounds = array<i64: 1, 256>}, {transform_indices = @transform_5, window_bounds = array<i64: 1, 16, 256>}]} {
    %c0 = arith.constant 0 : index
    %c0_0 = arith.constant 0 : index
    %c0_1 = arith.constant 0 : index
    %0 = vector.load %arg1[%c0, %c0_0, %c0_1] : memref<1x16x128xf32, #tpu.memory_space<vmem>>, vector<1x16x128xf32>
    %1 = vector.shape_cast %0 : vector<1x16x128xf32> to vector<16x128xf32>
    %c0_2 = arith.constant 0 : index
    %c0_3 = arith.constant 0 : index
    %c0_4 = arith.constant 0 : index
    %2 = vector.load %arg4[%c0_2, %c0_3, %c0_4] : memref<9x128x256xf32, #tpu.memory_space<vmem>>, vector<1x128x256xf32>
    %3 = vector.shape_cast %2 : vector<1x128x256xf32> to vector<128x256xf32>
    %cst = arith.constant dense<0.000000e+00> : vector<16x256xf32>
    %4 = tpu.matmul %1, %3, %cst {dimension_numbers = #tpu.dot_dimension_numbers<[1], [0], [0], [1], [0, 0, 1, 1], [], []>} : vector<16x128xf32>, vector<128x256xf32>, vector<16x256xf32> -> vector<16x256xf32>
    %c0_5 = arith.constant 0 : index
    %c0_6 = arith.constant 0 : index
    %c0_7 = arith.constant 0 : index
    %5 = vector.load %arg2[%c0_5, %c0_6, %c0_7] : memref<3x16x16xf32, #tpu.memory_space<vmem>>, vector<1x16x16xf32>
    %6 = vector.shape_cast %5 : vector<1x16x16xf32> to vector<16x16xf32>
    %cst_8 = arith.constant dense<0.000000e+00> : vector<16x128xf32>
    %7 = tpu.matmul %6, %1, %cst_8 {dimension_numbers = #tpu.dot_dimension_numbers<[0], [0], [1], [1], [0, 1, 1, 1], [], []>} : vector<16x16xf32>, vector<16x128xf32>, vector<16x128xf32> -> vector<16x128xf32>
    %c1 = arith.constant 1 : index
    %c0_9 = arith.constant 0 : index
    %c0_10 = arith.constant 0 : index
    %8 = vector.load %arg4[%c1, %c0_9, %c0_10] : memref<9x128x256xf32, #tpu.memory_space<vmem>>, vector<1x128x256xf32>
    %9 = vector.shape_cast %8 : vector<1x128x256xf32> to vector<128x256xf32>
    %cst_11 = arith.constant dense<0.000000e+00> : vector<16x256xf32>
    %10 = tpu.matmul %7, %9, %cst_11 {dimension_numbers = #tpu.dot_dimension_numbers<[1], [0], [0], [1], [0, 0, 1, 1], [], []>} : vector<16x128xf32>, vector<128x256xf32>, vector<16x256xf32> -> vector<16x256xf32>
    %11 = arith.addf %4, %10 : vector<16x256xf32>
    %cst_12 = arith.constant dense<0.000000e+00> : vector<16x128xf32>
    %12 = tpu.matmul %6, %7, %cst_12 {dimension_numbers = #tpu.dot_dimension_numbers<[0], [0], [1], [1], [0, 1, 1, 1], [], []>} : vector<16x16xf32>, vector<16x128xf32>, vector<16x128xf32> -> vector<16x128xf32>
    %c2 = arith.constant 2 : index
    %c0_13 = arith.constant 0 : index
    %c0_14 = arith.constant 0 : index
    %13 = vector.load %arg4[%c2, %c0_13, %c0_14] : memref<9x128x256xf32, #tpu.memory_space<vmem>>, vector<1x128x256xf32>
    %14 = vector.shape_cast %13 : vector<1x128x256xf32> to vector<128x256xf32>
    %cst_15 = arith.constant dense<0.000000e+00> : vector<16x256xf32>
    %15 = tpu.matmul %12, %14, %cst_15 {dimension_numbers = #tpu.dot_dimension_numbers<[1], [0], [0], [1], [0, 0, 1, 1], [], []>} : vector<16x128xf32>, vector<128x256xf32>, vector<16x256xf32> -> vector<16x256xf32>
    %16 = arith.addf %11, %15 : vector<16x256xf32>
    %c1_16 = arith.constant 1 : index
    %c0_17 = arith.constant 0 : index
    %c0_18 = arith.constant 0 : index
    %17 = vector.load %arg2[%c1_16, %c0_17, %c0_18] : memref<3x16x16xf32, #tpu.memory_space<vmem>>, vector<1x16x16xf32>
    %18 = vector.shape_cast %17 : vector<1x16x16xf32> to vector<16x16xf32>
    %cst_19 = arith.constant dense<0.000000e+00> : vector<16x128xf32>
    %19 = tpu.matmul %18, %1, %cst_19 {dimension_numbers = #tpu.dot_dimension_numbers<[0], [0], [1], [1], [0, 1, 1, 1], [], []>} : vector<16x16xf32>, vector<16x128xf32>, vector<16x128xf32> -> vector<16x128xf32>
    %c3 = arith.constant 3 : index
    %c0_20 = arith.constant 0 : index
    %c0_21 = arith.constant 0 : index
    %20 = vector.load %arg4[%c3, %c0_20, %c0_21] : memref<9x128x256xf32, #tpu.memory_space<vmem>>, vector<1x128x256xf32>
    %21 = vector.shape_cast %20 : vector<1x128x256xf32> to vector<128x256xf32>
    %cst_22 = arith.constant dense<0.000000e+00> : vector<16x256xf32>
    %22 = tpu.matmul %19, %21, %cst_22 {dimension_numbers = #tpu.dot_dimension_numbers<[1], [0], [0], [1], [0, 0, 1, 1], [], []>} : vector<16x128xf32>, vector<128x256xf32>, vector<16x256xf32> -> vector<16x256xf32>
    %23 = arith.addf %16, %22 : vector<16x256xf32>
    %cst_23 = arith.constant dense<0.000000e+00> : vector<16x128xf32>
    %24 = tpu.matmul %18, %19, %cst_23 {dimension_numbers = #tpu.dot_dimension_numbers<[0], [0], [1], [1], [0, 1, 1, 1], [], []>} : vector<16x16xf32>, vector<16x128xf32>, vector<16x128xf32> -> vector<16x128xf32>
    %c4 = arith.constant 4 : index
    %c0_24 = arith.constant 0 : index
    %c0_25 = arith.constant 0 : index
    %25 = vector.load %arg4[%c4, %c0_24, %c0_25] : memref<9x128x256xf32, #tpu.memory_space<vmem>>, vector<1x128x256xf32>
    %26 = vector.shape_cast %25 : vector<1x128x256xf32> to vector<128x256xf32>
    %cst_26 = arith.constant dense<0.000000e+00> : vector<16x256xf32>
    %27 = tpu.matmul %24, %26, %cst_26 {dimension_numbers = #tpu.dot_dimension_numbers<[1], [0], [0], [1], [0, 0, 1, 1], [], []>} : vector<16x128xf32>, vector<128x256xf32>, vector<16x256xf32> -> vector<16x256xf32>
    %28 = arith.addf %23, %27 : vector<16x256xf32>
    %c2_27 = arith.constant 2 : index
    %c0_28 = arith.constant 0 : index
    %c0_29 = arith.constant 0 : index
    %29 = vector.load %arg2[%c2_27, %c0_28, %c0_29] : memref<3x16x16xf32, #tpu.memory_space<vmem>>, vector<1x16x16xf32>
    %30 = vector.shape_cast %29 : vector<1x16x16xf32> to vector<16x16xf32>
    %cst_30 = arith.constant dense<0.000000e+00> : vector<16x128xf32>
    %31 = tpu.matmul %30, %1, %cst_30 {dimension_numbers = #tpu.dot_dimension_numbers<[0], [0], [1], [1], [0, 1, 1, 1], [], []>} : vector<16x16xf32>, vector<16x128xf32>, vector<16x128xf32> -> vector<16x128xf32>
    %c5 = arith.constant 5 : index
    %c0_31 = arith.constant 0 : index
    %c0_32 = arith.constant 0 : index
    %32 = vector.load %arg4[%c5, %c0_31, %c0_32] : memref<9x128x256xf32, #tpu.memory_space<vmem>>, vector<1x128x256xf32>
    %33 = vector.shape_cast %32 : vector<1x128x256xf32> to vector<128x256xf32>
    %cst_33 = arith.constant dense<0.000000e+00> : vector<16x256xf32>
    %34 = tpu.matmul %31, %33, %cst_33 {dimension_numbers = #tpu.dot_dimension_numbers<[1], [0], [0], [1], [0, 0, 1, 1], [], []>} : vector<16x128xf32>, vector<128x256xf32>, vector<16x256xf32> -> vector<16x256xf32>
    %35 = arith.addf %28, %34 : vector<16x256xf32>
    %cst_34 = arith.constant dense<0.000000e+00> : vector<16x128xf32>
    %36 = tpu.matmul %30, %31, %cst_34 {dimension_numbers = #tpu.dot_dimension_numbers<[0], [0], [1], [1], [0, 1, 1, 1], [], []>} : vector<16x16xf32>, vector<16x128xf32>, vector<16x128xf32> -> vector<16x128xf32>
    %c6 = arith.constant 6 : index
    %c0_35 = arith.constant 0 : index
    %c0_36 = arith.constant 0 : index
    %37 = vector.load %arg4[%c6, %c0_35, %c0_36] : memref<9x128x256xf32, #tpu.memory_space<vmem>>, vector<1x128x256xf32>
    %38 = vector.shape_cast %37 : vector<1x128x256xf32> to vector<128x256xf32>
    %cst_37 = arith.constant dense<0.000000e+00> : vector<16x256xf32>
    %39 = tpu.matmul %36, %38, %cst_37 {dimension_numbers = #tpu.dot_dimension_numbers<[1], [0], [0], [1], [0, 0, 1, 1], [], []>} : vector<16x128xf32>, vector<128x256xf32>, vector<16x256xf32> -> vector<16x256xf32>
    %40 = arith.addf %35, %39 : vector<16x256xf32>
    %c0_38 = arith.constant 0 : index
    %c0_39 = arith.constant 0 : index
    %c0_40 = arith.constant 0 : index
    %c0_41 = arith.constant 0 : index
    %41 = vector.load %arg3[%c0_38, %c0_39, %c0_40, %c0_41] : memref<1x1x16x16xf32, #tpu.memory_space<vmem>>, vector<1x1x16x16xf32>
    %42 = vector.shape_cast %41 : vector<1x1x16x16xf32> to vector<16x16xf32>
    %cst_42 = arith.constant dense<0.000000e+00> : vector<16x128xf32>
    %43 = tpu.matmul %42, %1, %cst_42 {dimension_numbers = #tpu.dot_dimension_numbers<[0], [0], [1], [1], [0, 1, 1, 1], [], []>} : vector<16x16xf32>, vector<16x128xf32>, vector<16x128xf32> -> vector<16x128xf32>
    %c7 = arith.constant 7 : index
    %c0_43 = arith.constant 0 : index
    %c0_44 = arith.constant 0 : index
    %44 = vector.load %arg4[%c7, %c0_43, %c0_44] : memref<9x128x256xf32, #tpu.memory_space<vmem>>, vector<1x128x256xf32>
    %45 = vector.shape_cast %44 : vector<1x128x256xf32> to vector<128x256xf32>
    %cst_45 = arith.constant dense<0.000000e+00> : vector<16x256xf32>
    %46 = tpu.matmul %43, %45, %cst_45 {dimension_numbers = #tpu.dot_dimension_numbers<[1], [0], [0], [1], [0, 0, 1, 1], [], []>} : vector<16x128xf32>, vector<128x256xf32>, vector<16x256xf32> -> vector<16x256xf32>
    %47 = arith.addf %40, %46 : vector<16x256xf32>
    %cst_46 = arith.constant dense<0.000000e+00> : vector<16x128xf32>
    %48 = tpu.matmul %42, %43, %cst_46 {dimension_numbers = #tpu.dot_dimension_numbers<[0], [0], [1], [1], [0, 1, 1, 1], [], []>} : vector<16x16xf32>, vector<16x128xf32>, vector<16x128xf32> -> vector<16x128xf32>
    %c8 = arith.constant 8 : index
    %c0_47 = arith.constant 0 : index
    %c0_48 = arith.constant 0 : index
    %49 = vector.load %arg4[%c8, %c0_47, %c0_48] : memref<9x128x256xf32, #tpu.memory_space<vmem>>, vector<1x128x256xf32>
    %50 = vector.shape_cast %49 : vector<1x128x256xf32> to vector<128x256xf32>
    %cst_49 = arith.constant dense<0.000000e+00> : vector<16x256xf32>
    %51 = tpu.matmul %48, %50, %cst_49 {dimension_numbers = #tpu.dot_dimension_numbers<[1], [0], [0], [1], [0, 0, 1, 1], [], []>} : vector<16x128xf32>, vector<128x256xf32>, vector<16x256xf32> -> vector<16x256xf32>
    %52 = arith.addf %47, %51 : vector<16x256xf32>
    %c0_50 = arith.constant 0 : index
    %c0_51 = arith.constant 0 : index
    %53 = vector.load %arg5[%c0_50, %c0_51] : memref<1x256xf32, #tpu.memory_space<vmem>>, vector<1x256xf32>
    %54 = vector.broadcast %53 : vector<1x256xf32> to vector<16x256xf32>
    %55 = arith.addf %52, %54 : vector<16x256xf32>
    %c0_52 = arith.constant 0 : index
    %c0_53 = arith.constant 0 : index
    %c0_54 = arith.constant 0 : index
    %56 = vector.load %arg6[%c0_52, %c0_53, %c0_54] : memref<1x16x256xf32, #tpu.memory_space<vmem>>, vector<1x16x256xf32>
    %57 = vector.shape_cast %56 : vector<1x16x256xf32> to vector<16x256xf32>
    %58 = vector.shape_cast %55 : vector<16x256xf32> to vector<1x16x256xf32>
    tpu.vector_store %arg6[%c0_52, %c0_53, %c0_54], %58 {strides = array<i32>} : memref<1x16x256xf32, #tpu.memory_space<vmem>>, vector<1x16x256xf32>,
    return
  }
  func.func @transform_0(%arg0: i32) -> (i32, i32, i32) {
    %c0_i32 = arith.constant 0 : i32
    %c0_i32_0 = arith.constant 0 : i32
    %c0_i32_1 = arith.constant 0 : i32
    return %arg0, %c0_i32, %c0_i32_0 : i32, i32, i32
  }
  func.func @transform_1(%arg0: i32) -> (i32, i32, i32) {
    %c0_i32 = arith.constant 0 : i32
    %c0_i32_0 = arith.constant 0 : i32
    %c0_i32_1 = arith.constant 0 : i32
    %c0_i32_2 = arith.constant 0 : i32
    return %c0_i32, %c0_i32_0, %c0_i32_1 : i32, i32, i32
  }
  func.func @transform_2(%arg0: i32) -> (i32, i32, i32, i32) {
    %c0_i32 = arith.constant 0 : i32
    %c0_i32_0 = arith.constant 0 : i32
    %c0_i32_1 = arith.constant 0 : i32
    %c0_i32_2 = arith.constant 0 : i32
    return %c0_i32, %arg0, %c0_i32_0, %c0_i32_1 : i32, i32, i32, i32
  }
  func.func @transform_3(%arg0: i32) -> (i32, i32, i32) {
    %c0_i32 = arith.constant 0 : i32
    %c0_i32_0 = arith.constant 0 : i32
    %c0_i32_1 = arith.constant 0 : i32
    %c0_i32_2 = arith.constant 0 : i32
    return %c0_i32, %c0_i32_0, %c0_i32_1 : i32, i32, i32
  }
  func.func @transform_4(%arg0: i32) -> (i32, i32) {
    %c0_i32 = arith.constant 0 : i32
    %c0_i32_0 = arith.constant 0 : i32
    %c0_i32_1 = arith.constant 0 : i32
    return %c0_i32, %c0_i32_0 : i32, i32
  }
  func.func @transform_5(%arg0: i32) -> (i32, i32, i32) {
    %c0_i32 = arith.constant 0 : i32
    %c0_i32_0 = arith.constant 0 : i32
    %c0_i32_1 = arith.constant 0 : i32
    return %arg0, %c0_i32, %c0_i32_0 : i32, i32, i32
  }
}

</mosaic_0001>

<bundles_post_ra>
// kernel: gcn_forward.1
= control target key start
LH: loop header
LB: loop body
LE: loop exit
PB: predicated region body
PF: predicated region fallthrough
CT: control target
= control target key end

     0   :  { %s2544_s18 = smov 0   ;;  %s3583_s0 = inlined_call_operand.vmem [shape: f32[2,16,128], index: 0, kind: input, shape index: {}]   ;;  %s3584_s1 = inlined_call_operand.vmem [shape: f32[3,16,16], index: 1, kind: input, shape index: {}]   ;;  %s3585_s2 = inlined_call_operand.vmem [shape: f32[1,2,16,16], index: 2, kind: input, shape index: {}]   ;;  %s3586_s3 = inlined_call_operand.vmem [shape: f32[9,128,256], index: 3, kind: input, shape index: {}]   ;;  %s3587_s4 = inlined_call_operand.vmem [shape: f32[1,256], index: 4, kind: input, shape index: {}]   ;;  %s3588_s5 = inlined_call_operand.vmem [shape: f32[2,16,256], index: 5, kind: output, shape index: {}]  }
   0x1 LB: > { %s2114_s19 = sadd.s32 4294967295, %s2511_s18   ;;  %p2118_p0 = scmp.ge.s32.totalorder %s2511_s18, 1  ;;  %s2511_s18 = sphi %s2544_s18, %s15_s18  }
   0x2   : > { %p197_p1 = scmp.lt.s32.totalorder %s2511_s18, 3 }
   0x4   : > { %p198_p2 = pnand %p2118_p0, %p197_p1 }
   0x5   : > { %p230_p3 = scmp.lt.s32.totalorder (!%p198_p2), %s2114_s19, 1 }
   0x6   : > { %201 = sbr.rel (%p198_p2) target bundleno = 1360 (0x550), region = 40 }
   0xb   : > { %v279_v0 = vld [vmem:[%s3584_s1] sm:$0xff]  ;;  %v280_v1 = vld [vmem:[%s3584_s1 + $0x8] sm:$0xff]  ;;  %s3590_s19 = smov (!%p230_p3, %s2114_s19), 1  ;;  %v2193_v2 = vld [vmem:[%s3584_s1 + $0x10] sm:$0xff]  ;;  %vm313_vm0 = vcmask 130048  }
   0xc   : > { %281 = vxpose.xlu0.b32.start [1/2] (short) (narrow) %v279_v0, 16  ;;  %774 = vxpose.xlu1.b32.start [1/2] (short) (narrow) %v2193_v2, 16  ;;  %s2403_s26 = sshll.u32 %s3590_s19, 4  ;;  %v2194_v3 = vld [vmem:[%s3584_s1 + $0x18] sm:$0xff]  ;;  %v277_v5 = vld [vmem:[%s3586_s3 + $0xf0] sm:$0xff]  ;;  %v276_v8 = vld [vmem:[%s3586_s3 + $0xe8] sm:$0xff] }
   0xd   : > { %v278_v4 = vld [vmem:[%s3586_s3 + $0xf8] sm:$0xff]  ;;  %s2575_s8 = scalar_lea.vmem %s3583_s0, %s2403_s26  ;;  %v275_v9 = vld [vmem:[%s3586_s3 + $0xe0] sm:$0xff]  ;;  %v273_v12 = vld [vmem:[%s3586_s3 + $0xd0] sm:$0xff]  ;;  %s239_s17 = scalar_lea.vmem %s3585_s2, %s2403_s26 }
   0xe   : > { %505 = vmatprep.subr.mxu0 %v278_v4  ;;  %v2581_v6 = vld [vmem:[%s2575_s8 + $0x8] sm:$0xff]  ;;  %v2584_v7 = vld [vmem:[%s2575_s8] sm:$0xff]  ;;  %v2158_v10 = vld [vmem:[%s3586_s3 + $0x1f8] sm:$0xff]  ;;  %s2405_s27 = sshll.u32 %s3590_s19, 5 }
   0xf   : > { %506 = vmatpush1.msra.mxu0 %v277_v5  ;;  %2438 = vmatprep.subr.mxu1 %v2581_v6  ;;  %v274_v11 = vld [vmem:[%s3586_s3 + $0xd8] sm:$0xff]  ;;  %v272_v13 = vld [vmem:[%s3586_s3 + $0xc8] sm:$0xff]  ;;  %v271_v14 = vld [vmem:[%s3586_s3 + $0xc0] sm:$0xff]  ;;  %s244_s29 = scalar_lea.vmem %s3588_s5, %s2405_s27 }
  0x10   : > { %282 = vxpose.xlu0.b32.end [2/2] (short) (narrow) %v280_v1, 16  ;;  %775 = vxpose.xlu1.b32.end [2/2] (short) (narrow) %v2194_v3, 16  ;;  %v270_v15 = vld [vmem:[%s3586_s3 + $0xb8] sm:$0xff]  ;;  %v269_v16 = vld [vmem:[%s3586_s3 + $0xb0] sm:$0xff]  ;;  %v268_v17 = vld [vmem:[%s3586_s3 + $0xa8] sm:$0xff] }
  0x11   : > { %2439 = vmatpush3.msra.mxu1 %v2581_v6  ;;  %507 = vmatprep.subr.mxu0 %v276_v8  ;;  %v267_v18 = vld [vmem:[%s3586_s3 + $0xa0] sm:$0xff]  ;;  %v266_v19 = vld [vmem:[%s3586_s3 + $0x98] sm:$0xff]  ;;  %v265_v20 = vld [vmem:[%s3586_s3 + $0x90] sm:$0xff] }
  0x12   : > { %2440 = vmatprep.subr.mxu1 %v2584_v7  ;;  %508 = vmatpush1.msra.mxu0 %v275_v9  ;;  %v264_v21 = vld [vmem:[%s3586_s3 + $0x88] sm:$0xff]  ;;  %v263_v22 = vld [vmem:[%s3586_s3 + $0x80] sm:$0xff]  ;;  %v262_v23 = vld [vmem:[%s3586_s3 + $0x78] sm:$0xff] }
  0x13   : > { %2441 = vmatpush3.msra.mxu1 %v2584_v7  ;;  %509 = vmatprep.subr.mxu0 %v274_v11  ;;  %v261_v24 = vld [vmem:[%s3586_s3 + $0x70] sm:$0xff]  ;;  %v260_v25 = vld [vmem:[%s3586_s3 + $0x68] sm:$0xff]  ;;  %v259_v26 = vld [vmem:[%s3586_s3 + $0x60] sm:$0xff] }
  0x14   : > { %428 = vmatprep.subr.mxu1 %v2158_v10  ;;  %510 = vmatpush1.msra.mxu0 %v273_v12  ;;  %v258_v27 = vld [vmem:[%s3586_s3 + $0x58] sm:$0xff]  ;;  %v257_v28 = vld [vmem:[%s3586_s3 + $0x50] sm:$0xff]  ;;  %v256_v29 = vld [vmem:[%s3586_s3 + $0x48] sm:$0xff]  ;;  %v2513_v10 = vmov 0.0  }
  0x15   : > { %511 = vmatprep.subr.mxu0 %v272_v13  ;;  %v255_v30 = vld [vmem:[%s3586_s3 + $0x40] sm:$0xff]  ;;  %v254_v31 = vld [vmem:[%s3586_s3 + $0x38] sm:$0xff]  ;;  %v253_v32 = vld [vmem:[%s3586_s3 + $0x30] sm:$0xff]  ;;  %569 = vmatprep.mubr.f32.mxu0 %v2513_v10 }
  0x16   : > { %512 = vmatpush1.msra.mxu0 %v271_v14  ;;  %v252_v33 = vld [vmem:[%s3586_s3 + $0x28] sm:$0xff]  ;;  %v251_v34 = vld [vmem:[%s3586_s3 + $0x20] sm:$0xff]  ;;  %v250_v35 = vld [vmem:[%s3586_s3 + $0x18] sm:$0xff] }
  0x17   : > { %513 = vmatprep.subr.mxu0 %v270_v15  ;;  %v2157_v37 = vld [vmem:[%s3586_s3 + $0x1f0] sm:$0xff]  ;;  %v2156_v39 = vld [vmem:[%s3586_s3 + $0x1e8] sm:$0xff]  ;;  %v2155_v40 = vld [vmem:[%s3586_s3 + $0x1e0] sm:$0xff] }
  0x18   : > { %514 = vmatpush1.msra.mxu0 %v269_v16  ;;  %v2154_v41 = vld [vmem:[%s3586_s3 + $0x1d8] sm:$0xff]  ;;  %v2153_v42 = vld [vmem:[%s3586_s3 + $0x1d0] sm:$0xff]  ;;  %v2152_v43 = vld [vmem:[%s3586_s3 + $0x1c8] sm:$0xff] }
  0x19   : > { %515 = vmatprep.subr.mxu0 %v268_v17  ;;  %v2151_v44 = vld [vmem:[%s3586_s3 + $0x1c0] sm:$0xff]  ;;  %v2150_v45 = vld [vmem:[%s3586_s3 + $0x1b8] sm:$0xff]  ;;  %v2149_v46 = vld [vmem:[%s3586_s3 + $0x1b0] sm:$0xff] }
  0x1a   : > { %516 = vmatpush1.msra.mxu0 %v267_v18  ;;  %v2148_v47 = vld [vmem:[%s3586_s3 + $0x1a8] sm:$0xff]  ;;  %v2147_v48 = vld [vmem:[%s3586_s3 + $0x1a0] sm:$0xff]  ;;  %v2146_v49 = vld [vmem:[%s3586_s3 + $0x198] sm:$0xff] }
  0x1b   : > { %517 = vmatprep.subr.mxu0 %v266_v19  ;;  %v2145_v50 = vld [vmem:[%s3586_s3 + $0x190] sm:$0xff]  ;;  %v2144_v51 = vld [vmem:[%s3586_s3 + $0x188] sm:$0xff]  ;;  %v2143_v52 = vld [vmem:[%s3586_s3 + $0x180] sm:$0xff] }
  0x1c   : > { %518 = vmatpush1.msra.mxu0 %v265_v20  ;;  %v2142_v53 = vld [vmem:[%s3586_s3 + $0x178] sm:$0xff]  ;;  %v2141_v54 = vld [vmem:[%s3586_s3 + $0x170] sm:$0xff]  ;;  %v2140_v55 = vld [vmem:[%s3586_s3 + $0x168] sm:$0xff] }
  0x1d   : > { %519 = vmatprep.subr.mxu0 %v264_v21  ;;  %v2139_v56 = vld [vmem:[%s3586_s3 + $0x160] sm:$0xff]  ;;  %v2138_v57 = vld [vmem:[%s3586_s3 + $0x158] sm:$0xff]  ;;  %v2137_v58 = vld [vmem:[%s3586_s3 + $0x150] sm:$0xff] }
  0x1e   : > { %520 = vmatpush1.msra.mxu0 %v263_v22  ;;  %v2136_v59 = vld [vmem:[%s3586_s3 + $0x148] sm:$0xff]  ;;  %v2135_v60 = vld [vmem:[%s3586_s3 + $0x140] sm:$0xff]  ;;  %v2134_v61 = vld [vmem:[%s3586_s3 + $0x138] sm:$0xff] }
  0x1f   : > { %521 = vmatprep.subr.mxu0 %v262_v23  ;;  %v2133_v62 = vld [vmem:[%s3586_s3 + $0x130] sm:$0xff]  ;;  %v2132_v63 = vld [vmem:[%s3586_s3 + $0x128] sm:$0xff]  ;;  %v2131_v0 = vld [vmem:[%s3586_s3 + $0x120] sm:$0xff] }
  0x20   : > { %522 = vmatpush1.msra.mxu0 %v261_v24  ;;  %v2130_v1 = vld [vmem:[%s3586_s3 + $0x118] sm:$0xff]  ;;  %v2129_v2 = vld [vmem:[%s3586_s3 + $0x110] sm:$0xff]  ;;  %v2128_v3 = vld [vmem:[%s3586_s3 + $0x108] sm:$0xff] }
  0x21   : > { %523 = vmatprep.subr.mxu0 %v260_v25  ;;  %v2127_v4 = vld [vmem:[%s3586_s3 + $0x100] sm:$0xff]  ;;  %v249_v5 = vld [vmem:[%s3586_s3 + $0x10] sm:$0xff]  ;;  %v248_v8 = vld [vmem:[%s3586_s3 + $0x8] sm:$0xff] }
  0x22   : > { %524 = vmatpush1.msra.mxu0 %v259_v26  ;;  %v247_v9 = vld [vmem:[%s3586_s3] sm:$0xff]  ;;  %v2192_v12 = vld [vmem:[%s3586_s3 + $0x2f8] sm:$0xff]  ;;  %v2191_v13 = vld [vmem:[%s3586_s3 + $0x2f0] sm:$0xff] }
  0x23   : > { %525 = vmatprep.subr.mxu0 %v258_v27  ;;  %v2263_v11 = vld [vmem:[%s3584_s1 + $0x20] sm:$0xff]  ;;  %v2190_v14 = vld [vmem:[%s3586_s3 + $0x2e8] sm:$0xff]  ;;  %v2188_v17 = vld [vmem:[%s3586_s3 + $0x2d8] sm:$0xff] }
  0x24   : > { %526 = vmatpush1.msra.mxu0 %v257_v28  ;;  %1193 = vxpose.xlu0.b32.start [1/2] (short) (narrow) %v2263_v11, 16  ;;  %v2264_v15 = vld [vmem:[%s3584_s1 + $0x28] sm:$0xff]  ;;  %v2189_v16 = vld [vmem:[%s3586_s3 + $0x2e0] sm:$0xff]  ;;  %v2187_v18 = vld [vmem:[%s3586_s3 + $0x2d0] sm:$0xff] }
  0x25   : > { %527 = vmatprep.subr.mxu0 %v256_v29  ;;  %v2186_v19 = vld [vmem:[%s3586_s3 + $0x2c8] sm:$0xff]  ;;  %v2185_v20 = vld [vmem:[%s3586_s3 + $0x2c0] sm:$0xff]  ;;  %v2184_v21 = vld [vmem:[%s3586_s3 + $0x2b8] sm:$0xff] }
  0x26   : > { %528 = vmatpush1.msra.mxu0 %v255_v30  ;;  %v2183_v22 = vld [vmem:[%s3586_s3 + $0x2b0] sm:$0xff]  ;;  %v2182_v23 = vld [vmem:[%s3586_s3 + $0x2a8] sm:$0xff]  ;;  %v2181_v24 = vld [vmem:[%s3586_s3 + $0x2a0] sm:$0xff] }
  0x27   : > { %529 = vmatprep.subr.mxu0 %v254_v31  ;;  %v2180_v25 = vld [vmem:[%s3586_s3 + $0x298] sm:$0xff]  ;;  %v2179_v26 = vld [vmem:[%s3586_s3 + $0x290] sm:$0xff]  ;;  %v2178_v27 = vld [vmem:[%s3586_s3 + $0x288] sm:$0xff] }
  0x28   : > { %530 = vmatpush1.msra.mxu0 %v253_v32  ;;  %1194 = vxpose.xlu0.b32.end [2/2] (short) (narrow) %v2264_v15, 16  ;;  %v2177_v28 = vld [vmem:[%s3586_s3 + $0x280] sm:$0xff]  ;;  %v2176_v29 = vld [vmem:[%s3586_s3 + $0x278] sm:$0xff]  ;;  %v2175_v30 = vld [vmem:[%s3586_s3 + $0x270] sm:$0xff] }
  0x29   : > { %531 = vmatprep.subr.mxu0 %v252_v33  ;;  %v2174_v31 = vld [vmem:[%s3586_s3 + $0x268] sm:$0xff]  ;;  %v2173_v32 = vld [vmem:[%s3586_s3 + $0x260] sm:$0xff]  ;;  %v2172_v33 = vld [vmem:[%s3586_s3 + $0x258] sm:$0xff] }
  0x2a   : > { %532 = vmatpush1.msra.mxu0 %v251_v34  ;;  %v2202_v11 = vld [vmem:[%s3586_s3 + $0x328] sm:$0xff]  ;;  %v2200_v15 = vld [vmem:[%s3586_s3 + $0x318] sm:$0xff] }
  0x2b   : > { %533 = vmatprep.subr.mxu0 %v250_v35 }
  0x2c   : > { %534 = vmatpush1.msra.mxu0 %v249_v5  ;;  %v2165_v5 = vld [vmem:[%s3586_s3 + $0x220] sm:$0xff] }
  0x2d   : > { %535 = vmatprep.subr.mxu0 %v248_v8  ;;  %v2203_v8 = vld [vmem:[%s3586_s3 + $0x330] sm:$0xff] }
  0x2e   : > { %536 = vmatpush1.msra.mxu0 %v247_v9  ;;  %v2164_v9 = vld [vmem:[%s3586_s3 + $0x218] sm:$0xff] }
  0x2f   : > { %570 = vmatmul.mubr.f32.vlgmr.msra.gmra.mxu0 %v2584_v7  ;;  %690 = vmatprep.subr.mxu0 %v2192_v12  ;;  %v2163_v12 = vld [vmem:[%s3586_s3 + $0x210] sm:$0xff] }
  0x30   : > { %575 = vmatprep.mubr.f32.mxu0 %v2513_v10  ;;  %691 = vmatpush1.msra.mxu0 %v2191_v13  ;;  %v2201_v13 = vld [vmem:[%s3586_s3 + $0x320] sm:$0xff] }
  0x31   : > { %692 = vmatprep.subr.mxu0 %v2190_v14  ;;  %v2162_v14 = vld [vmem:[%s3586_s3 + $0x208] sm:$0xff] }
  0x32   : > { %693 = vmatpush1.msra.mxu0 %v2189_v16  ;;  %v2161_v16 = vld [vmem:[%s3586_s3 + $0x200] sm:$0xff] }
  0x33   : > { %576 = vmatmul.mubr.f32.gmra.mxu0 %v2581_v6  ;;  %694 = vmatprep.subr.mxu0 %v2188_v17  ;;  %v2199_v17 = vld [vmem:[%s3586_s3 + $0x310] sm:$0xff] }
  0x34   : > { %754 = vmatprep.mubr.f32.mxu0 %v2513_v10  ;;  %695 = vmatpush1.msra.mxu0 %v2187_v18  ;;  %v2198_v18 = vld [vmem:[%s3586_s3 + $0x308] sm:$0xff] }
  0x35   : > { %696 = vmatprep.subr.mxu0 %v2186_v19  ;;  %v2197_v19 = vld [vmem:[%s3586_s3 + $0x300] sm:$0xff] }
  0x36   : > { %697 = vmatpush1.msra.mxu0 %v2185_v20  ;;  %v2262_v20 = vld [vmem:[%s3586_s3 + $0x4f8] sm:$0xff] }
  0x37   : > { %698 = vmatprep.subr.mxu0 %v2184_v21  ;;  %v1609_v21 = vld [vmem:[%s239_s17] sm:$0xff] }
  0x38   : > { %699 = vmatpush1.msra.mxu0 %v2183_v22  ;;  %1611 = vxpose.xlu1.b32.start [1/2] (short) (narrow) %v1609_v21, 16  ;;  %v1610_v22 = vld [vmem:[%s239_s17 + $0x8] sm:$0xff]  ;;  %v2235_v21 = vld [vmem:[%s3586_s3 + $0x420] sm:$0xff] }
  0x39   : > { %700 = vmatprep.subr.mxu0 %v2182_v23 }
  0x3a   : > { %701 = vmatpush1.msra.mxu0 %v2181_v24 }
  0x3b   : > { %702 = vmatprep.subr.mxu0 %v2180_v25 }
  0x3c   : > { %703 = vmatpush1.msra.mxu0 %v2179_v26  ;;  %1612 = vxpose.xlu1.b32.end [2/2] (short) (narrow) %v1610_v22, 16  ;;  %v2273_v22 = vld [vmem:[%s3586_s3 + $0x530] sm:$0xff] }
  0x3d   : > { %704 = vmatprep.subr.mxu0 %v2178_v27 }
  0x3e   : > { %705 = vmatpush1.msra.mxu0 %v2177_v28  ;;  %v2261_v28 = vld [vmem:[%s3586_s3 + $0x4f0] sm:$0xff] }
  0x3f   : > { %706 = vmatprep.subr.mxu0 %v2176_v29 }
  0x40   : > { %707 = vmatpush1.msra.mxu0 %v2175_v30  ;;  %v2260_v30 = vld [vmem:[%s3586_s3 + $0x4e8] sm:$0xff] }
  0x41   : > { %708 = vmatprep.subr.mxu0 %v2174_v31  ;;  %v2259_v31 = vld [vmem:[%s3586_s3 + $0x4e0] sm:$0xff] }
  0x42   : > { %709 = vmatpush1.msra.mxu0 %v2173_v32 }
  0x43   : > { %710 = vmatprep.subr.mxu0 %v2172_v33 }
  0x88   : > { %v2674_v36 = vpop.trf.xlu0 }
  0x89   : > { %2442 = vmatprep.mubr.msk.f32.mxu1 %vm313_vm0, %v2674_v36 }
  0x8c   : > { %v2681_v38 = vpop.trf.xlu0 }
  0x8d   : > { %2443 = vmatmul.mubr.msk.f32.vlgmr.msra.gmra.mxu1 %vm313_vm0, %v2681_v38 }
  0x8e   : > { %429 = vmatpush1.msra.mxu1 %v2157_v37  ;;  %492 = vmatprep.mubr.f32.mxu1 %v2513_v10  ;;  %v2860_v37 = vpop.trf.xlu1 }
  0x8f   : > { %430 = vmatprep.subr.mxu1 %v2156_v39 }
  0x90   : > { %431 = vmatpush1.msra.mxu1 %v2155_v40  ;;  %v2228_v40 = vld [vmem:[%s3586_s3 + $0x3f8] sm:$0xff] }
  0x91   : > { %432 = vmatprep.subr.mxu1 %v2154_v41  ;;  %v2225_v41 = vld [vmem:[%s3586_s3 + $0x3e0] sm:$0xff] }
  0x92   : > { %433 = vmatpush1.msra.mxu1 %v2153_v42  ;;  %v2870_v39 = vpop.trf.xlu1  ;;  %v2224_v42 = vld [vmem:[%s3586_s3 + $0x3d8] sm:$0xff] }
  0x93   : > { %434 = vmatprep.subr.mxu1 %v2152_v43  ;;  %v2223_v43 = vld [vmem:[%s3586_s3 + $0x3d0] sm:$0xff] }
  0x94   : > { %435 = vmatpush1.msra.mxu1 %v2151_v44  ;;  %v2222_v44 = vld [vmem:[%s3586_s3 + $0x3c8] sm:$0xff] }
  0x95   : > { %436 = vmatprep.subr.mxu1 %v2150_v45  ;;  %v2221_v45 = vld [vmem:[%s3586_s3 + $0x3c0] sm:$0xff] }
  0x96   : > { %437 = vmatpush1.msra.mxu1 %v2149_v46  ;;  %v2220_v46 = vld [vmem:[%s3586_s3 + $0x3b8] sm:$0xff] }
  0x97   : > { %438 = vmatprep.subr.mxu1 %v2148_v47  ;;  %v2219_v47 = vld [vmem:[%s3586_s3 + $0x3b0] sm:$0xff] }
  0x98   : > { %439 = vmatpush1.msra.mxu1 %v2147_v48  ;;  %v2218_v48 = vld [vmem:[%s3586_s3 + $0x3a8] sm:$0xff] }
  0x99   : > { %440 = vmatprep.subr.mxu1 %v2146_v49  ;;  %v2217_v49 = vld [vmem:[%s3586_s3 + $0x3a0] sm:$0xff] }
  0x9a   : > { %441 = vmatpush1.msra.mxu1 %v2145_v50  ;;  %v2216_v50 = vld [vmem:[%s3586_s3 + $0x398] sm:$0xff] }
  0x9b   : > { %442 = vmatprep.subr.mxu1 %v2144_v51  ;;  %v2215_v51 = vld [vmem:[%s3586_s3 + $0x390] sm:$0xff] }
  0x9c   : > { %443 = vmatpush1.msra.mxu1 %v2143_v52  ;;  %v2214_v52 = vld [vmem:[%s3586_s3 + $0x388] sm:$0xff] }
  0x9d   : > { %444 = vmatprep.subr.mxu1 %v2142_v53  ;;  %v2213_v53 = vld [vmem:[%s3586_s3 + $0x380] sm:$0xff] }
  0x9e   : > { %445 = vmatpush1.msra.mxu1 %v2141_v54  ;;  %v2212_v54 = vld [vmem:[%s3586_s3 + $0x378] sm:$0xff] }
  0x9f   : > { %446 = vmatprep.subr.mxu1 %v2140_v55  ;;  %v2211_v55 = vld [vmem:[%s3586_s3 + $0x370] sm:$0xff] }
  0xa0   : > { %447 = vmatpush1.msra.mxu1 %v2139_v56  ;;  %v2210_v56 = vld [vmem:[%s3586_s3 + $0x368] sm:$0xff] }
  0xa1   : > { %448 = vmatprep.subr.mxu1 %v2138_v57  ;;  %v2171_v57 = vld [vmem:[%s3586_s3 + $0x250] sm:$0xff] }
  0xa2   : > { %449 = vmatpush1.msra.mxu1 %v2137_v58  ;;  %v2209_v58 = vld [vmem:[%s3586_s3 + $0x360] sm:$0xff]  ;;  %711 = vmatpush1.msra.mxu0 %v2171_v57  ;;  %v2288_v57 = vld [vmem:[%s3586_s3 + $0x5a8] sm:$0xff] }
  0xa3   : > { %450 = vmatprep.subr.mxu1 %v2136_v59  ;;  %v2170_v59 = vld [vmem:[%s3586_s3 + $0x248] sm:$0xff] }
  0xa4   : > { %451 = vmatpush1.msra.mxu1 %v2135_v60  ;;  %v2208_v60 = vld [vmem:[%s3586_s3 + $0x358] sm:$0xff]  ;;  %712 = vmatprep.subr.mxu0 %v2170_v59 }
  0xa5   : > { %452 = vmatprep.subr.mxu1 %v2134_v61  ;;  %v2169_v61 = vld [vmem:[%s3586_s3 + $0x240] sm:$0xff]  ;;  %v2286_v59 = vld [vmem:[%s3586_s3 + $0x598] sm:$0xff] }
  0xa6   : > { %453 = vmatpush1.msra.mxu1 %v2133_v62  ;;  %v2207_v62 = vld [vmem:[%s3586_s3 + $0x350] sm:$0xff]  ;;  %713 = vmatpush1.msra.mxu0 %v2169_v61  ;;  %v2284_v61 = vld [vmem:[%s3586_s3 + $0x588] sm:$0xff] }
  0xa7   : > { %454 = vmatprep.subr.mxu1 %v2132_v63  ;;  %v2168_v63 = vld [vmem:[%s3586_s3 + $0x238] sm:$0xff] }
  0xa8   : > { %455 = vmatpush1.msra.mxu1 %v2131_v0  ;;  %v2206_v0 = vld [vmem:[%s3586_s3 + $0x348] sm:$0xff]  ;;  %714 = vmatprep.subr.mxu0 %v2168_v63  ;;  %v2283_v63 = vld [vmem:[%s3586_s3 + $0x580] sm:$0xff] }
  0xa9   : > { %456 = vmatprep.subr.mxu1 %v2130_v1  ;;  %v2167_v1 = vld [vmem:[%s3586_s3 + $0x230] sm:$0xff] }
  0xaa   : > { %457 = vmatpush1.msra.mxu1 %v2129_v2  ;;  %v2205_v2 = vld [vmem:[%s3586_s3 + $0x340] sm:$0xff]  ;;  %715 = vmatpush1.msra.mxu0 %v2167_v1  ;;  %v2282_v1 = vld [vmem:[%s3586_s3 + $0x578] sm:$0xff] }
  0xab   : > { %458 = vmatprep.subr.mxu1 %v2128_v3  ;;  %v2166_v3 = vld [vmem:[%s3586_s3 + $0x228] sm:$0xff] }
  0xac   : > { %459 = vmatpush1.msra.mxu1 %v2127_v4  ;;  %v2204_v4 = vld [vmem:[%s3586_s3 + $0x338] sm:$0xff]  ;;  %716 = vmatprep.subr.mxu0 %v2166_v3  ;;  %v2281_v3 = vld [vmem:[%s3586_s3 + $0x570] sm:$0xff] }
  0xad   : > { %717 = vmatpush1.msra.mxu0 %v2165_v5  ;;  %v2280_v5 = vld [vmem:[%s3586_s3 + $0x568] sm:$0xff] }
  0xae   : > { %718 = vmatprep.subr.mxu0 %v2164_v9  ;;  %v2279_v9 = vld [vmem:[%s3586_s3 + $0x560] sm:$0xff] }
  0xaf   : > { %719 = vmatpush1.msra.mxu0 %v2163_v12  ;;  %v2278_v12 = vld [vmem:[%s3586_s3 + $0x558] sm:$0xff] }
  0xb0   : > { %720 = vmatprep.subr.mxu0 %v2162_v14  ;;  %v2277_v14 = vld [vmem:[%s3586_s3 + $0x550] sm:$0xff] }
  0xb1   : > { %721 = vmatpush1.msra.mxu0 %v2161_v16  ;;  %v2276_v16 = vld [vmem:[%s3586_s3 + $0x548] sm:$0xff] }
  0xb2   : > { %1109 = vmatprep.subr.mxu0 %v2262_v20  ;;  %v2274_v20 = vld [vmem:[%s3586_s3 + $0x538] sm:$0xff] }
 0x14d   : > { %v2444_v34 = vpop.f32.mrf.mxu1 }
 0x14e   : > { %2445 = vmatprep.subr.mxu1 %v2444_v34 }
 0x14f   : > { %v386_v35 = vpop.f32.mrf.mxu1 }
 0x150   : > { %493 = vmatmul.mubr.f32.vlgmr.msra.gmra.mxu1 %v386_v35 }
 0x151   : > { %2446 = vmatpush3.msra.mxu1 %v2444_v34  ;;  %498 = vmatprep.mubr.f32.mxu1 %v2513_v10 }
 0x152   : > { %2447 = vmatprep.subr.mxu1 %v386_v35 }
 0x153   : > { %2448 = vmatpush3.msra.mxu1 %v386_v35  ;;  %v2257_v35 = vld [vmem:[%s3586_s3 + $0x4d0] sm:$0xff] }
 0x154   : > { %499 = vmatmul.mubr.f32.gmra.mxu1 %v2444_v34  ;;  %2452 = vmatprep.subr.mxu1 %v2581_v6  ;;  %v2258_v34 = vld [vmem:[%s3586_s3 + $0x4d8] sm:$0xff] }
 0x155   : > { %2449 = vmatprep.mubr.msk.f32.mxu1 %vm313_vm0, %v2674_v36  ;;  %v2227_v36 = vld [vmem:[%s3586_s3 + $0x3f0] sm:$0xff] }
 0x158   : > { %2450 = vmatmul.mubr.msk.f32.vlgmr.msra.gmra.mxu1 %vm313_vm0, %v2681_v38  ;;  %v2226_v38 = vld [vmem:[%s3586_s3 + $0x3e8] sm:$0xff] }
 0x159   : > { %2453 = vmatpush3.msra.mxu1 %v2581_v6  ;;  %2456 = vmatprep.mubr.msk.f32.mxu1 %vm313_vm0, %v2860_v37 }
 0x15a   : > { %2454 = vmatprep.subr.mxu1 %v2584_v7 }
 0x15b   : > { %2455 = vmatpush3.msra.mxu1 %v2584_v7 }
 0x15c   : > { %2457 = vmatmul.mubr.msk.f32.vlgmr.msra.gmra.mxu1 %vm313_vm0, %v2870_v39  ;;  %920 = vmatprep.subr.mxu1 %v2228_v40  ;;  %v2256_v40 = vld [vmem:[%s3586_s3 + $0x4c8] sm:$0xff] }
 0x15d   : > { %921 = vmatpush1.msra.mxu1 %v2227_v36  ;;  %984 = vmatprep.mubr.f32.mxu1 %v2513_v10  ;;  %v3042_v36 = vpop.trf.xlu0 }
 0x15e   : > { %922 = vmatprep.subr.mxu1 %v2226_v38  ;;  %v2255_v38 = vld [vmem:[%s3586_s3 + $0x4c0] sm:$0xff] }
 0x15f   : > { %923 = vmatpush1.msra.mxu1 %v2225_v41  ;;  %v2254_v41 = vld [vmem:[%s3586_s3 + $0x4b8] sm:$0xff] }
 0x160   : > { %924 = vmatprep.subr.mxu1 %v2224_v42  ;;  %v2253_v42 = vld [vmem:[%s3586_s3 + $0x4b0] sm:$0xff] }
 0x161   : > { %925 = vmatpush1.msra.mxu1 %v2223_v43  ;;  %v2252_v43 = vld [vmem:[%s3586_s3 + $0x4a8] sm:$0xff] }
 0x162   : > { %926 = vmatprep.subr.mxu1 %v2222_v44  ;;  %v3068_v44 = vpop.trf.xlu0 }
 0x163   : > { %927 = vmatpush1.msra.mxu1 %v2221_v45  ;;  %v2298_v45 = vld [vmem:[%s3586_s3 + $0x5f8] sm:$0xff] }
 0x164   : > { %928 = vmatprep.subr.mxu1 %v2220_v46  ;;  %v2296_v46 = vld [vmem:[%s3586_s3 + $0x5e8] sm:$0xff] }
 0x165   : > { %929 = vmatpush1.msra.mxu1 %v2219_v47  ;;  %v2249_v47 = vld [vmem:[%s3586_s3 + $0x490] sm:$0xff] }
 0x166   : > { %930 = vmatprep.subr.mxu1 %v2218_v48  ;;  %v2295_v48 = vld [vmem:[%s3586_s3 + $0x5e0] sm:$0xff] }
 0x167   : > { %931 = vmatpush1.msra.mxu1 %v2217_v49  ;;  %v2294_v49 = vld [vmem:[%s3586_s3 + $0x5d8] sm:$0xff] }
 0x168   : > { %932 = vmatprep.subr.mxu1 %v2216_v50  ;;  %v2247_v50 = vld [vmem:[%s3586_s3 + $0x480] sm:$0xff] }
 0x169   : > { %933 = vmatpush1.msra.mxu1 %v2215_v51  ;;  %v2293_v51 = vld [vmem:[%s3586_s3 + $0x5d0] sm:$0xff] }
 0x16a   : > { %934 = vmatprep.subr.mxu1 %v2214_v52  ;;  %v2246_v52 = vld [vmem:[%s3586_s3 + $0x478] sm:$0xff] }
 0x16b   : > { %935 = vmatpush1.msra.mxu1 %v2213_v53  ;;  %v2292_v53 = vld [vmem:[%s3586_s3 + $0x5c8] sm:$0xff] }
 0x16c   : > { %936 = vmatprep.subr.mxu1 %v2212_v54  ;;  %v2291_v54 = vld [vmem:[%s3586_s3 + $0x5c0] sm:$0xff] }
 0x16d   : > { %937 = vmatpush1.msra.mxu1 %v2211_v55  ;;  %v2290_v55 = vld [vmem:[%s3586_s3 + $0x5b8] sm:$0xff] }
 0x16e   : > { %938 = vmatprep.subr.mxu1 %v2210_v56  ;;  %v2289_v56 = vld [vmem:[%s3586_s3 + $0x5b0] sm:$0xff] }
 0x16f   : > { %939 = vmatpush1.msra.mxu1 %v2209_v58  ;;  %v2287_v58 = vld [vmem:[%s3586_s3 + $0x5a0] sm:$0xff] }
 0x170   : > { %940 = vmatprep.subr.mxu1 %v2208_v60  ;;  %v2285_v60 = vld [vmem:[%s3586_s3 + $0x590] sm:$0xff] }
 0x171   : > { %941 = vmatpush1.msra.mxu1 %v2207_v62  ;;  %v2245_v62 = vld [vmem:[%s3586_s3 + $0x470] sm:$0xff] }
 0x172   : > { %942 = vmatprep.subr.mxu1 %v2206_v0  ;;  %v2244_v0 = vld [vmem:[%s3586_s3 + $0x468] sm:$0xff] }
 0x173   : > { %943 = vmatpush1.msra.mxu1 %v2205_v2  ;;  %v2243_v2 = vld [vmem:[%s3586_s3 + $0x460] sm:$0xff] }
 0x174   : > { %944 = vmatprep.subr.mxu1 %v2204_v4  ;;  %v2242_v4 = vld [vmem:[%s3586_s3 + $0x458] sm:$0xff] }
 0x175   : > { %945 = vmatpush1.msra.mxu1 %v2203_v8  ;;  %v2241_v8 = vld [vmem:[%s3586_s3 + $0x450] sm:$0xff] }
 0x176   : > { %946 = vmatprep.subr.mxu1 %v2202_v11  ;;  %v2240_v11 = vld [vmem:[%s3586_s3 + $0x448] sm:$0xff] }
 0x177   : > { %947 = vmatpush1.msra.mxu1 %v2201_v13  ;;  %v2239_v13 = vld [vmem:[%s3586_s3 + $0x440] sm:$0xff] }
 0x178   : > { %948 = vmatprep.subr.mxu1 %v2200_v15  ;;  %v2238_v15 = vld [vmem:[%s3586_s3 + $0x438] sm:$0xff] }
 0x179   : > { %949 = vmatpush1.msra.mxu1 %v2199_v17  ;;  %v2237_v17 = vld [vmem:[%s3586_s3 + $0x430] sm:$0xff] }
 0x17a   : > { %950 = vmatprep.subr.mxu1 %v2198_v18  ;;  %v2275_v18 = vld [vmem:[%s3586_s3 + $0x540] sm:$0xff] }
 0x17b   : > { %951 = vmatpush1.msra.mxu1 %v2197_v19  ;;  %v2236_v19 = vld [vmem:[%s3586_s3 + $0x428] sm:$0xff] }
 0x210   : > { %v3014_v23 = vpop.f32.mrf.mxu1 }
 0x212   : > { %v3016_v24 = vpop.f32.mrf.mxu1 }
 0x214   : > { %v3018_v25 = vpop.f32.mrf.mxu1 }
 0x216   : > { %v3020_v26 = vpop.f32.mrf.mxu1 }
 0x218   : > { %v2451_v27 = vpop.f32.mrf.mxu1 }
 0x21a   : > { %v648_v29 = vpop.f32.mrf.mxu1 }
 0x21b   : > { %755 = vmatmul.mubr.f32.vlgmr.msra.gmra.mxu0 %v648_v29  ;;  %v2233_v29 = vld [vmem:[%s3586_s3 + $0x410] sm:$0xff] }
 0x21c   : > { %v2458_v32 = vpop.f32.mrf.mxu1  ;;  %760 = vmatprep.mubr.f32.mxu0 %v2513_v10  ;;  %1110 = vmatpush1.msra.mxu0 %v2261_v28  ;;  %v2272_v28 = vld [vmem:[%s3586_s3 + $0x528] sm:$0xff] }
 0x21d   : > { %2459 = vmatprep.subr.mxu1 %v2458_v32  ;;  %1111 = vmatprep.subr.mxu0 %v2260_v30  ;;  %v2271_v30 = vld [vmem:[%s3586_s3 + $0x520] sm:$0xff] }
 0x21e   : > { %v878_v33 = vpop.f32.mrf.mxu1  ;;  %1112 = vmatpush1.msra.mxu0 %v2259_v31  ;;  %v2232_v31 = vld [vmem:[%s3586_s3 + $0x408] sm:$0xff] }
 0x21f   : > { %761 = vmatmul.mubr.f32.gmra.mxu0 %v2451_v27  ;;  %985 = vmatmul.mubr.f32.vlgmr.msra.gmra.mxu1 %v878_v33  ;;  %v2234_v27 = vld [vmem:[%s3586_s3 + $0x418] sm:$0xff] }
 0x220   : > { %2460 = vmatpush3.msra.mxu1 %v2458_v32  ;;  %990 = vmatprep.mubr.f32.mxu1 %v2513_v10 }
 0x221   : > { %2461 = vmatprep.subr.mxu1 %v878_v33  ;;  %1113 = vmatprep.subr.mxu0 %v2258_v34  ;;  %v2269_v34 = vld [vmem:[%s3586_s3 + $0x510] sm:$0xff] }
 0x222   : > { %2462 = vmatpush3.msra.mxu1 %v878_v33  ;;  %1114 = vmatpush1.msra.mxu0 %v2257_v35  ;;  %v2231_v33 = vld [vmem:[%s3586_s3 + $0x400] sm:$0xff]  ;;  %v2268_v35 = vld [vmem:[%s3586_s3 + $0x508] sm:$0xff] }
 0x223   : > { %991 = vmatmul.mubr.f32.gmra.mxu1 %v2458_v32  ;;  %2466 = vmatprep.subr.mxu1 %v2581_v6  ;;  %v2270_v32 = vld [vmem:[%s3586_s3 + $0x518] sm:$0xff] }
 0x224   : > { %2463 = vmatprep.mubr.msk.f32.mxu1 %vm313_vm0, %v2860_v37  ;;  %1115 = vmatprep.subr.mxu0 %v2256_v40  ;;  %v2251_v37 = vld [vmem:[%s3586_s3 + $0x4a0] sm:$0xff] }
 0x225   : > { %1116 = vmatpush1.msra.mxu0 %v2255_v38  ;;  %1173 = vmatprep.mubr.f32.mxu0 %v2513_v10  ;;  %v2267_v40 = vld [vmem:[%s3586_s3 + $0x500] sm:$0xff]  ;;  %v2332_v38 = vld [vmem:[%s3586_s3 + $0x6f8] sm:$0xff] }
 0x226   : > { %1117 = vmatprep.subr.mxu0 %v2254_v41  ;;  %v571_v41 = vpop.f32.mrf.mxu0 }
 0x227   : > { %2464 = vmatmul.mubr.msk.f32.vlgmr.msra.gmra.mxu1 %vm313_vm0, %v2870_v39  ;;  %1118 = vmatpush1.msra.mxu0 %v2253_v42  ;;  %v2297_v39 = vld [vmem:[%s3586_s3 + $0x5f0] sm:$0xff] }
 0x228   : > { %2467 = vmatpush3.msra.mxu1 %v2581_v6  ;;  %2470 = vmatprep.mubr.msk.f32.mxu1 %vm313_vm0, %v3042_v36  ;;  %v2250_v6 = vld [vmem:[%s3586_s3 + $0x498] sm:$0xff]  ;;  %v573_v42 = vpop.f32.mrf.mxu0 }
 0x229   : > { %2468 = vmatprep.subr.mxu1 %v2584_v7  ;;  %1119 = vmatprep.subr.mxu0 %v2252_v43 }
 0x22a   : > { %2469 = vmatpush3.msra.mxu1 %v2584_v7  ;;  %1120 = vmatpush1.msra.mxu0 %v2251_v37  ;;  %v2248_v7 = vld [vmem:[%s3586_s3 + $0x488] sm:$0xff]  ;;  %v577_v43 = vpop.f32.mrf.mxu0 }
 0x22b   : > { %2471 = vmatmul.mubr.msk.f32.vlgmr.msra.gmra.mxu1 %vm313_vm0, %v3068_v44  ;;  %1339 = vmatprep.subr.mxu1 %v2298_v45  ;;  %v572_v45 = vadd.f32 %v571_v41, %v3014_v23  ;;  %v2314_v41 = vld [vmem:[%s3586_s3 + $0x668] sm:$0xff] }
 0x22c   : > { %1340 = vmatpush1.msra.mxu1 %v2297_v39  ;;  %1121 = vmatprep.subr.mxu0 %v2250_v6  ;;  %v579_v37 = vpop.f32.mrf.mxu0  ;;  %v574_v6 = vadd.f32 %v573_v42, %v3016_v24  ;;  %v2352_v42 = vld [vmem:[%s3586_s3 + $0x788] sm:$0xff] }
 0x22d   : > { %1341 = vmatprep.subr.mxu1 %v2296_v46  ;;  %1122 = vmatpush1.msra.mxu0 %v2249_v47 }
 0x22e   : > { %1342 = vmatpush1.msra.mxu1 %v2295_v48  ;;  %1123 = vmatprep.subr.mxu0 %v2248_v7  ;;  %v578_v48 = vadd.f32 %v577_v43, %v3018_v25  ;;  %v2313_v43 = vld [vmem:[%s3586_s3 + $0x660] sm:$0xff] }
 0x22f   : > { %1343 = vmatprep.subr.mxu1 %v2294_v49  ;;  %1124 = vmatpush1.msra.mxu0 %v2247_v50 }
 0x230   : > { %1344 = vmatpush1.msra.mxu1 %v2293_v51  ;;  %1125 = vmatprep.subr.mxu0 %v2246_v52 }
 0x231   : > { %1345 = vmatprep.subr.mxu1 %v2292_v53  ;;  %1403 = vmatprep.mubr.f32.mxu1 %v2513_v10 }
 0x232   : > { %1346 = vmatpush1.msra.mxu1 %v2291_v54  ;;  %1126 = vmatpush1.msra.mxu0 %v2245_v62  ;;  %v2330_v62 = vld [vmem:[%s3586_s3 + $0x6e8] sm:$0xff] }
 0x233   : > { %1347 = vmatprep.subr.mxu1 %v2290_v55  ;;  %1127 = vmatprep.subr.mxu0 %v2244_v0  ;;  %v580_v55 = vadd.f32 %v579_v37, %v3020_v26  ;;  %v2329_v26 = vld [vmem:[%s3586_s3 + $0x6e0] sm:$0xff] }
 0x234   : > { %1348 = vmatpush1.msra.mxu1 %v2289_v56  ;;  %1128 = vmatpush1.msra.mxu0 %v2243_v2  ;;  %v2327_v2 = vld [vmem:[%s3586_s3 + $0x6d0] sm:$0xff]  ;;  %v2351_v37 = vld [vmem:[%s3586_s3 + $0x780] sm:$0xff] }
 0x235   : > { %1349 = vmatprep.subr.mxu1 %v2288_v57  ;;  %1129 = vmatprep.subr.mxu0 %v2242_v4  ;;  %v3266_v4 = vpop.trf.xlu1 }
 0x236   : > { %1350 = vmatpush1.msra.mxu1 %v2287_v58  ;;  %1130 = vmatpush1.msra.mxu0 %v2241_v8  ;;  %v2503_v8 = vld [vmem:[%s2575_s8 + $0x8] sm:$0xff] }
 0x237   : > { %1351 = vmatprep.subr.mxu1 %v2286_v59  ;;  %1131 = vmatprep.subr.mxu0 %v2240_v11  ;;  %v2323_v11 = vld [vmem:[%s3586_s3 + $0x6b0] sm:$0xff] }
 0x238   : > { %1352 = vmatpush1.msra.mxu1 %v2285_v60  ;;  %1132 = vmatpush1.msra.mxu0 %v2239_v13  ;;  %v2331_v60 = vld [vmem:[%s3586_s3 + $0x6f0] sm:$0xff] }
 0x239   : > { %1353 = vmatprep.subr.mxu1 %v2284_v61  ;;  %1133 = vmatprep.subr.mxu0 %v2238_v15  ;;  %v3291_v13 = vpop.trf.xlu1  ;;  %v2504_v15 = vld [vmem:[%s2575_s8] sm:$0xff] }
 0x23a   : > { %1354 = vmatpush1.msra.mxu1 %v2283_v63  ;;  %1134 = vmatpush1.msra.mxu0 %v2237_v17  ;;  %v2364_v17 = vld [vmem:[%s3586_s3 + $0x7e8] sm:$0xff] }
 0x23b   : > { %1355 = vmatprep.subr.mxu1 %v2282_v1  ;;  %1135 = vmatprep.subr.mxu0 %v2236_v19  ;;  %v2328_v1 = vld [vmem:[%s3586_s3 + $0x6d8] sm:$0xff]  ;;  %v2363_v19 = vld [vmem:[%s3586_s3 + $0x7e0] sm:$0xff] }
 0x23c   : > { %1356 = vmatpush1.msra.mxu1 %v2281_v3  ;;  %1136 = vmatpush1.msra.mxu0 %v2235_v21  ;;  %v2326_v3 = vld [vmem:[%s3586_s3 + $0x6c8] sm:$0xff]  ;;  %v2362_v21 = vld [vmem:[%s3586_s3 + $0x7d8] sm:$0xff] }
 0x23d   : > { %1357 = vmatprep.subr.mxu1 %v2280_v5  ;;  %1137 = vmatprep.subr.mxu0 %v2234_v27  ;;  %v2325_v5 = vld [vmem:[%s3586_s3 + $0x6c0] sm:$0xff]  ;;  %v2361_v27 = vld [vmem:[%s3586_s3 + $0x7d0] sm:$0xff] }
 0x23e   : > { %1358 = vmatpush1.msra.mxu1 %v2279_v9  ;;  %1138 = vmatpush1.msra.mxu0 %v2233_v29  ;;  %v2324_v9 = vld [vmem:[%s3586_s3 + $0x6b8] sm:$0xff]  ;;  %v2360_v29 = vld [vmem:[%s3586_s3 + $0x7c8] sm:$0xff] }
 0x23f   : > { %1359 = vmatprep.subr.mxu1 %v2278_v12  ;;  %1139 = vmatprep.subr.mxu0 %v2232_v31  ;;  %v2322_v12 = vld [vmem:[%s3586_s3 + $0x6a8] sm:$0xff]  ;;  %v2358_v31 = vld [vmem:[%s3586_s3 + $0x7b8] sm:$0xff] }
 0x240   : > { %1360 = vmatpush1.msra.mxu1 %v2277_v14  ;;  %1140 = vmatpush1.msra.mxu0 %v2231_v33  ;;  %v2366_v14 = vld [vmem:[%s3586_s3 + $0x7f8] sm:$0xff]  ;;  %v2356_v33 = vld [vmem:[%s3586_s3 + $0x7a8] sm:$0xff] }
 0x241   : > { %1361 = vmatprep.subr.mxu1 %v2276_v16  ;;  %1528 = vmatprep.subr.mxu0 %v2332_v38  ;;  %v2320_v16 = vld [vmem:[%s3586_s3 + $0x698] sm:$0xff]  ;;  %v2353_v38 = vld [vmem:[%s3586_s3 + $0x790] sm:$0xff] }
 0x242   : > { %1362 = vmatpush1.msra.mxu1 %v2275_v18  ;;  %v2319_v18 = vld [vmem:[%s3586_s3 + $0x690] sm:$0xff] }
 0x243   : > { %1363 = vmatprep.subr.mxu1 %v2274_v20  ;;  %v2318_v20 = vld [vmem:[%s3586_s3 + $0x688] sm:$0xff] }
 0x244   : > { %1364 = vmatpush1.msra.mxu1 %v2273_v22  ;;  %v2317_v22 = vld [vmem:[%s3586_s3 + $0x680] sm:$0xff] }
 0x245   : > { %1365 = vmatprep.subr.mxu1 %v2272_v28  ;;  %v2316_v28 = vld [vmem:[%s3586_s3 + $0x678] sm:$0xff] }
 0x246   : > { %1366 = vmatpush1.msra.mxu1 %v2271_v30  ;;  %v2359_v30 = vld [vmem:[%s3586_s3 + $0x7c0] sm:$0xff] }
 0x247   : > { %1367 = vmatprep.subr.mxu1 %v2270_v32  ;;  %v2357_v32 = vld [vmem:[%s3586_s3 + $0x7b0] sm:$0xff] }
 0x248   : > { %1368 = vmatpush1.msra.mxu1 %v2269_v34  ;;  %v2355_v34 = vld [vmem:[%s3586_s3 + $0x7a0] sm:$0xff] }
 0x249   : > { %1369 = vmatprep.subr.mxu1 %v2268_v35  ;;  %v2354_v35 = vld [vmem:[%s3586_s3 + $0x798] sm:$0xff] }
 0x24a   : > { %1370 = vmatpush1.msra.mxu1 %v2267_v40  ;;  %v2315_v40 = vld [vmem:[%s3586_s3 + $0x670] sm:$0xff] }
 0x2db   : > { %v756_v39 = vpop.f32.mrf.mxu0 }
 0x2dc   : > { %v767_v46 = vadd.f32 %v756_v39, %v572_v45  ;;  %v2312_v45 = vld [vmem:[%s3586_s3 + $0x658] sm:$0xff] }
 0x2dd   : > { %v758_v47 = vpop.f32.mrf.mxu0  ;;  %v2350_v39 = vld [vmem:[%s3586_s3 + $0x778] sm:$0xff] }
 0x2de   : > { %v768_v7 = vadd.f32 %v758_v47, %v574_v6  ;;  %v2311_v6 = vld [vmem:[%s3586_s3 + $0x650] sm:$0xff]  ;;  %v2310_v47 = vld [vmem:[%s3586_s3 + $0x648] sm:$0xff] }
 0x2df   : > { %v762_v49 = vpop.f32.mrf.mxu0  ;;  %v986_v50 = vpop.f32.mrf.mxu1 }
 0x2e0   : > { %v769_v51 = vadd.f32 %v762_v49, %v578_v48  ;;  %v3237_v52 = vadd.f32 %v986_v50, %v767_v46  ;;  %v2349_v46 = vld [vmem:[%s3586_s3 + $0x770] sm:$0xff]  ;;  %v2348_v48 = vld [vmem:[%s3586_s3 + $0x768] sm:$0xff]  ;;  %v2347_v49 = vld [vmem:[%s3586_s3 + $0x760] sm:$0xff] }
 0x2e1   : > { %v764_v53 = vpop.f32.mrf.mxu0  ;;  %v988_v54 = vpop.f32.mrf.mxu1  ;;  %v2308_v50 = vld [vmem:[%s3586_s3 + $0x638] sm:$0xff] }
 0x2e2   : > { %v3240_v56 = vadd.f32 %v988_v54, %v768_v7  ;;  %v770_v57 = vadd.f32 %v764_v53, %v580_v55  ;;  %v2309_v7 = vld [vmem:[%s3586_s3 + $0x640] sm:$0xff]  ;;  %v2307_v53 = vld [vmem:[%s3586_s3 + $0x630] sm:$0xff]  ;;  %v2306_v55 = vld [vmem:[%s3586_s3 + $0x628] sm:$0xff] }
 0x2e3   : > { %v992_v23 = vpop.f32.mrf.mxu1  ;;  %v2345_v54 = vld [vmem:[%s3586_s3 + $0x750] sm:$0xff] }
 0x2e4   : > { %v3242_v58 = vadd.f32 %v992_v23, %v769_v51  ;;  %v2346_v51 = vld [vmem:[%s3586_s3 + $0x758] sm:$0xff]  ;;  %v2344_v23 = vld [vmem:[%s3586_s3 + $0x748] sm:$0xff] }
 0x2e5   : > { %v994_v24 = vpop.f32.mrf.mxu1 }
 0x2e6   : > { %v3244_v59 = vadd.f32 %v994_v24, %v770_v57  ;;  %v2305_v57 = vld [vmem:[%s3586_s3 + $0x620] sm:$0xff] }
 0x2e7   : > { %v2465_v25 = vpop.f32.mrf.mxu1  ;;  %v2343_v24 = vld [vmem:[%s3586_s3 + $0x740] sm:$0xff] }
 0x2e9   : > { %v1067_v61 = vpop.f32.mrf.mxu1 }
 0x2ea   : > { %1174 = vmatmul.mubr.f32.vlgmr.msra.gmra.mxu0 %v1067_v61  ;;  %v2303_v61 = vld [vmem:[%s3586_s3 + $0x610] sm:$0xff] }
 0x2eb   : > { %v2472_v63 = vpop.f32.mrf.mxu1  ;;  %1179 = vmatprep.mubr.f32.mxu0 %v2513_v10  ;;  %1529 = vmatpush1.msra.mxu0 %v2331_v60  ;;  %v2342_v60 = vld [vmem:[%s3586_s3 + $0x738] sm:$0xff] }
 0x2ec   : > { %2473 = vmatprep.subr.mxu1 %v2472_v63  ;;  %1530 = vmatprep.subr.mxu0 %v2330_v62  ;;  %v2341_v62 = vld [vmem:[%s3586_s3 + $0x730] sm:$0xff] }
 0x2ed   : > { %v1297_v0 = vpop.f32.mrf.mxu1  ;;  %1531 = vmatpush1.msra.mxu0 %v2329_v26  ;;  %v2302_v26 = vld [vmem:[%s3586_s3 + $0x608] sm:$0xff] }
 0x2ee   : > { %1180 = vmatmul.mubr.f32.gmra.mxu0 %v2465_v25  ;;  %1404 = vmatmul.mubr.f32.vlgmr.msra.gmra.mxu1 %v1297_v0  ;;  %v2304_v25 = vld [vmem:[%s3586_s3 + $0x618] sm:$0xff] }
 0x2ef   : > { %2474 = vmatpush3.msra.mxu1 %v2472_v63  ;;  %1409 = vmatprep.mubr.f32.mxu1 %v2513_v10 }
 0x2f0   : > { %2475 = vmatprep.subr.mxu1 %v1297_v0  ;;  %1532 = vmatprep.subr.mxu0 %v2328_v1  ;;  %v2339_v1 = vld [vmem:[%s3586_s3 + $0x720] sm:$0xff] }
 0x2f1   : > { %2476 = vmatpush3.msra.mxu1 %v1297_v0  ;;  %1533 = vmatpush1.msra.mxu0 %v2327_v2  ;;  %v2301_v0 = vld [vmem:[%s3586_s3 + $0x600] sm:$0xff]  ;;  %v2338_v2 = vld [vmem:[%s3586_s3 + $0x718] sm:$0xff] }
 0x2f2   : > { %1410 = vmatmul.mubr.f32.gmra.mxu1 %v2472_v63  ;;  %2480 = vmatprep.subr.mxu1 %v2503_v8  ;;  %v2340_v63 = vld [vmem:[%s3586_s3 + $0x728] sm:$0xff] }
 0x2f3   : > { %2477 = vmatprep.mubr.msk.f32.mxu1 %vm313_vm0, %v3042_v36  ;;  %1534 = vmatprep.subr.mxu0 %v2326_v3  ;;  %v2321_v36 = vld [vmem:[%s3586_s3 + $0x6a0] sm:$0xff]  ;;  %v2337_v3 = vld [vmem:[%s3586_s3 + $0x710] sm:$0xff] }
 0x2f4   : > { %1535 = vmatpush1.msra.mxu0 %v2325_v5  ;;  %1592 = vmatprep.mubr.f32.mxu0 %v2513_v10  ;;  %v2336_v5 = vld [vmem:[%s3586_s3 + $0x708] sm:$0xff] }
 0x2f5   : > { %1536 = vmatprep.subr.mxu0 %v2324_v9 }
 0x2f6   : > { %2478 = vmatmul.mubr.msk.f32.vlgmr.msra.gmra.mxu1 %vm313_vm0, %v3068_v44  ;;  %1537 = vmatpush1.msra.mxu0 %v2323_v11  ;;  %v2365_v44 = vld [vmem:[%s3586_s3 + $0x7f0] sm:$0xff] }
 0x2f7   : > { %2481 = vmatpush3.msra.mxu1 %v2503_v8  ;;  %2484 = vmatprep.mubr.msk.f32.mxu1 %vm313_vm0, %v3266_v4  ;;  %v2335_v8 = vld [vmem:[%s3586_s3 + $0x700] sm:$0xff] }
 0x2f8   : > { %2482 = vmatprep.subr.mxu1 %v2504_v15  ;;  %1538 = vmatprep.subr.mxu0 %v2322_v12 }
 0x2f9   : > { %2483 = vmatpush3.msra.mxu1 %v2504_v15  ;;  %1539 = vmatpush1.msra.mxu0 %v2321_v36 }
 0x2fa   : > { %2485 = vmatmul.mubr.msk.f32.vlgmr.msra.gmra.mxu1 %vm313_vm0, %v3291_v13  ;;  %1757 = vmatprep.subr.mxu1 %v2366_v14 }
 0x2fb   : > { %1758 = vmatpush1.msra.mxu1 %v2365_v44  ;;  %1540 = vmatprep.subr.mxu0 %v2320_v16 }
 0x2fc   : > { %1759 = vmatprep.subr.mxu1 %v2364_v17  ;;  %1541 = vmatpush1.msra.mxu0 %v2319_v18 }
 0x2fd   : > { %1760 = vmatpush1.msra.mxu1 %v2363_v19  ;;  %1542 = vmatprep.subr.mxu0 %v2318_v20 }
 0x2fe   : > { %1761 = vmatprep.subr.mxu1 %v2362_v21  ;;  %1543 = vmatpush1.msra.mxu0 %v2317_v22 }
 0x2ff   : > { %1762 = vmatpush1.msra.mxu1 %v2361_v27  ;;  %1544 = vmatprep.subr.mxu0 %v2316_v28 }
 0x300   : > { %1763 = vmatprep.subr.mxu1 %v2360_v29  ;;  %1821 = vmatprep.mubr.f32.mxu1 %v2513_v10 }
 0x301   : > { %1764 = vmatpush1.msra.mxu1 %v2359_v30  ;;  %1545 = vmatpush1.msra.mxu0 %v2315_v40  ;;  %v2399_v30 = vld [vmem:[%s3586_s3 + $0x8f0] sm:$0xff] }
 0x302   : > { %1765 = vmatprep.subr.mxu1 %v2358_v31  ;;  %1546 = vmatprep.subr.mxu0 %v2314_v41  ;;  %v2398_v31 = vld [vmem:[%s3586_s3 + $0x8e8] sm:$0xff]  ;;  %v2391_v40 = vld [vmem:[%s3586_s3 + $0x8b0] sm:$0xff]  ;;  %v2389_v41 = vld [vmem:[%s3586_s3 + $0x8a0] sm:$0xff] }
 0x303   : > { %1766 = vmatpush1.msra.mxu1 %v2357_v32  ;;  %1547 = vmatpush1.msra.mxu0 %v2313_v43  ;;  %v2396_v32 = vld [vmem:[%s3586_s3 + $0x8d8] sm:$0xff]  ;;  %v2387_v43 = vld [vmem:[%s3586_s3 + $0x890] sm:$0xff] }
 0x304   : > { %1767 = vmatprep.subr.mxu1 %v2356_v33  ;;  %1548 = vmatprep.subr.mxu0 %v2312_v45  ;;  %v2395_v33 = vld [vmem:[%s3586_s3 + $0x8d0] sm:$0xff]  ;;  %v2385_v45 = vld [vmem:[%s3586_s3 + $0x880] sm:$0xff] }
 0x305   : > { %1768 = vmatpush1.msra.mxu1 %v2355_v34  ;;  %1549 = vmatpush1.msra.mxu0 %v2311_v6  ;;  %v2393_v34 = vld [vmem:[%s3586_s3 + $0x8c0] sm:$0xff]  ;;  %v2383_v6 = vld [vmem:[%s3586_s3 + $0x870] sm:$0xff] }
 0x306   : > { %1769 = vmatprep.subr.mxu1 %v2354_v35  ;;  %1550 = vmatprep.subr.mxu0 %v2310_v47  ;;  %v2392_v35 = vld [vmem:[%s3586_s3 + $0x8b8] sm:$0xff]  ;;  %v2381_v47 = vld [vmem:[%s3586_s3 + $0x860] sm:$0xff] }
 0x307   : > { %1770 = vmatpush1.msra.mxu1 %v2353_v38  ;;  %1551 = vmatpush1.msra.mxu0 %v2309_v7  ;;  %v2390_v38 = vld [vmem:[%s3586_s3 + $0x8a8] sm:$0xff]  ;;  %v2379_v7 = vld [vmem:[%s3586_s3 + $0x850] sm:$0xff] }
 0x308   : > { %1771 = vmatprep.subr.mxu1 %v2352_v42  ;;  %1552 = vmatprep.subr.mxu0 %v2308_v50  ;;  %v2388_v42 = vld [vmem:[%s3586_s3 + $0x898] sm:$0xff]  ;;  %v2377_v50 = vld [vmem:[%s3586_s3 + $0x840] sm:$0xff] }
 0x309   : > { %1772 = vmatpush1.msra.mxu1 %v2351_v37  ;;  %1553 = vmatpush1.msra.mxu0 %v2307_v53  ;;  %v2386_v37 = vld [vmem:[%s3586_s3 + $0x888] sm:$0xff]  ;;  %v2375_v53 = vld [vmem:[%s3586_s3 + $0x830] sm:$0xff] }
 0x30a   : > { %1773 = vmatprep.subr.mxu1 %v2350_v39  ;;  %1554 = vmatprep.subr.mxu0 %v2306_v55  ;;  %v2384_v39 = vld [vmem:[%s3586_s3 + $0x878] sm:$0xff]  ;;  %v2373_v55 = vld [vmem:[%s3586_s3 + $0x820] sm:$0xff] }
 0x30b   : > { %1774 = vmatpush1.msra.mxu1 %v2349_v46  ;;  %1555 = vmatpush1.msra.mxu0 %v2305_v57  ;;  %v2382_v46 = vld [vmem:[%s3586_s3 + $0x868] sm:$0xff]  ;;  %v2371_v57 = vld [vmem:[%s3586_s3 + $0x810] sm:$0xff] }
 0x30c   : > { %1775 = vmatprep.subr.mxu1 %v2348_v48  ;;  %1556 = vmatprep.subr.mxu0 %v2304_v25  ;;  %v2380_v48 = vld [vmem:[%s3586_s3 + $0x858] sm:$0xff]  ;;  %v2369_v25 = vld [vmem:[%s3586_s3 + $0x800] sm:$0xff] }
 0x30d   : > { %1776 = vmatpush1.msra.mxu1 %v2347_v49  ;;  %1557 = vmatpush1.msra.mxu0 %v2303_v61  ;;  %v2378_v49 = vld [vmem:[%s3586_s3 + $0x848] sm:$0xff] }
 0x30e   : > { %1777 = vmatprep.subr.mxu1 %v2346_v51  ;;  %1558 = vmatprep.subr.mxu0 %v2302_v26  ;;  %v2376_v51 = vld [vmem:[%s3586_s3 + $0x838] sm:$0xff] }
 0x30f   : > { %1778 = vmatpush1.msra.mxu1 %v2345_v54  ;;  %1559 = vmatpush1.msra.mxu0 %v2301_v0  ;;  %v2374_v54 = vld [vmem:[%s3586_s3 + $0x828] sm:$0xff] }
 0x310   : > { %1779 = vmatprep.subr.mxu1 %v2344_v23  ;;  %v2372_v23 = vld [vmem:[%s3586_s3 + $0x818] sm:$0xff] }
 0x311   : > { %1780 = vmatpush1.msra.mxu1 %v2343_v24  ;;  %v2370_v24 = vld [vmem:[%s3586_s3 + $0x808] sm:$0xff] }
 0x312   : > { %1781 = vmatprep.subr.mxu1 %v2342_v60 }
 0x313   : > { %1782 = vmatpush1.msra.mxu1 %v2341_v62 }
 0x314   : > { %1783 = vmatprep.subr.mxu1 %v2340_v63 }
 0x315   : > { %1784 = vmatpush1.msra.mxu1 %v2339_v1 }
 0x316   : > { %1785 = vmatprep.subr.mxu1 %v2338_v2 }
 0x317   : > { %1786 = vmatpush1.msra.mxu1 %v2337_v3 }
 0x318   : > { %1787 = vmatprep.subr.mxu1 %v2336_v5 }
 0x319   : > { %1788 = vmatpush1.msra.mxu1 %v2335_v8  ;;  %v2029_v8 = vlaneseq }
 0x3aa   : > { %v1175_v9 = vpop.f32.mrf.mxu0 }
 0x3ab   : > { %v1186_v11 = vadd.f32 %v1175_v9, %v3237_v52 }
 0x3ac   : > { %v1177_v12 = vpop.f32.mrf.mxu0 }
 0x3ad   : > { %v1187_v36 = vadd.f32 %v1177_v12, %v3240_v56 }
 0x3ae   : > { %v1181_v14 = vpop.f32.mrf.mxu0  ;;  %v1405_v15 = vpop.f32.mrf.mxu1 }
 0x3af   : > { %v1188_v44 = vadd.f32 %v1181_v14, %v3242_v58  ;;  %v3456_v16 = vadd.f32 %v1405_v15, %v1186_v11  ;;  %v2030_v11 = vshrl.u32 %v2029_v8, 7  ;;  %v2027_v14 = vld [vmem:[%s3587_s4] sm:$0x3] }
 0x3b0   : > { %v1183_v17 = vpop.f32.mrf.mxu0  ;;  %v1407_v18 = vpop.f32.mrf.mxu1 }
 0x3b1   : > { %v3458_v19 = vadd.f32 %v1407_v18, %v1187_v36  ;;  %v1189_v21 = vadd.f32 %v1183_v17, %v3244_v59  ;;  %v2400_v59 = vld [vmem:[%s3586_s3 + $0x8f8] sm:$0xff]  ;;  %v2031_v36 = vsub.s32 0, %v2030_v11  ;;  %v2035_v15 = vsub.s32 1, %v2030_v11 }
 0x3b2   : > { %v1411_v20 = vpop.f32.mrf.mxu1 }
 0x3b3   : > { %v3461_v22 = vadd.f32 %v1411_v20, %v1188_v44  ;;  %v2032_v17 = vrot.slane %v2027_v14, %v2031_v36 }
 0x3b4   : > { %v1413_v27 = vpop.f32.mrf.mxu1 }
 0x3b5   : > { %v3463_v52 = vadd.f32 %v1413_v27, %v1189_v21  ;;  %v2036_v21 = vrot.slane %v2027_v14, %v2035_v15 }
 0x3b6   : > { %v2479_v28 = vpop.f32.mrf.mxu1 }
 0x3b8   : > { %v1486_v56 = vpop.f32.mrf.mxu1 }
 0x3b9   : > { %1593 = vmatmul.mubr.f32.vlgmr.msra.gmra.mxu0 %v1486_v56 }
 0x3ba   : > { %v2486_v29 = vpop.f32.mrf.mxu1  ;;  %1598 = vmatprep.mubr.f32.mxu0 %v2513_v10 }
 0x3bb   : > { %2487 = vmatprep.subr.mxu0 %v2486_v29 }
 0x3bc   : > { %v1715_v58 = vpop.f32.mrf.mxu1  ;;  %2488 = vmatpush3.msra.mxu0 %v2486_v29 }
 0x3bd   : > { %1599 = vmatmul.mubr.f32.gmra.mxu0 %v2479_v28  ;;  %1822 = vmatmul.mubr.f32.vlgmr.msra.gmra.mxu1 %v1715_v58 }
 0x3be   : > { %2489 = vmatprep.subr.mxu0 %v1715_v58  ;;  %2491 = vmatprep.mubr.msk.f32.mxu0 %vm313_vm0, %v3266_v4  ;;  %v2397_v4 = vld [vmem:[%s3586_s3 + $0x8e0] sm:$0xff] }
 0x3bf   : > { %2490 = vmatpush3.msra.mxu0 %v1715_v58  ;;  %1827 = vmatprep.mubr.f32.mxu1 %v2513_v10 }
 0x3c0   : > { %1946 = vmatprep.subr.mxu0 %v2400_v59 }
 0x3c1   : > { %1828 = vmatmul.mubr.f32.gmra.mxu1 %v2486_v29  ;;  %2492 = vmatmul.mubr.msk.f32.vlgmr.msra.gmra.mxu0 %vm313_vm0, %v3291_v13  ;;  %v2394_v13 = vld [vmem:[%s3586_s3 + $0x8c8] sm:$0xff] }
 0x3c2   : > { %1947 = vmatpush1.msra.mxu0 %v2399_v30  ;;  %2010 = vmatprep.mubr.f32.mxu0 %v2513_v10 }
 0x3c3   : > { %1948 = vmatprep.subr.mxu0 %v2398_v31 }
 0x3c4   : > { %1949 = vmatpush1.msra.mxu0 %v2397_v4 }
 0x3c5   : > { %1950 = vmatprep.subr.mxu0 %v2396_v32 }
 0x3c6   : > { %1951 = vmatpush1.msra.mxu0 %v2395_v33 }
 0x3c7   : > { %1952 = vmatprep.subr.mxu0 %v2394_v13 }
 0x3c8   : > { %1953 = vmatpush1.msra.mxu0 %v2393_v34 }
 0x3c9   : > { %1954 = vmatprep.subr.mxu0 %v2392_v35 }
 0x3ca   : > { %1955 = vmatpush1.msra.mxu0 %v2391_v40 }
 0x3cb   : > { %1956 = vmatprep.subr.mxu0 %v2390_v38 }
 0x3cc   : > { %1957 = vmatpush1.msra.mxu0 %v2389_v41 }
 0x3cd   : > { %1958 = vmatprep.subr.mxu0 %v2388_v42 }
 0x3ce   : > { %1959 = vmatpush1.msra.mxu0 %v2387_v43 }
 0x3cf   : > { %1960 = vmatprep.subr.mxu0 %v2386_v37 }
 0x3d0   : > { %1961 = vmatpush1.msra.mxu0 %v2385_v45 }
 0x3d1   : > { %1962 = vmatprep.subr.mxu0 %v2384_v39 }
 0x3d2   : > { %1963 = vmatpush1.msra.mxu0 %v2383_v6 }
 0x3d3   : > { %1964 = vmatprep.subr.mxu0 %v2382_v46 }
 0x3d4   : > { %1965 = vmatpush1.msra.mxu0 %v2381_v47 }
 0x3d5   : > { %1966 = vmatprep.subr.mxu0 %v2380_v48 }
 0x3d6   : > { %1967 = vmatpush1.msra.mxu0 %v2379_v7 }
 0x3d7   : > { %1968 = vmatprep.subr.mxu0 %v2378_v49 }
 0x3d8   : > { %1969 = vmatpush1.msra.mxu0 %v2377_v50 }
 0x3d9   : > { %1970 = vmatprep.subr.mxu0 %v2376_v51 }
 0x3da   : > { %1971 = vmatpush1.msra.mxu0 %v2375_v53 }
 0x3db   : > { %1972 = vmatprep.subr.mxu0 %v2374_v54 }
 0x3dc   : > { %1973 = vmatpush1.msra.mxu0 %v2373_v55 }
 0x3dd   : > { %1974 = vmatprep.subr.mxu0 %v2372_v23 }
 0x3de   : > { %1975 = vmatpush1.msra.mxu0 %v2371_v57 }
 0x3df   : > { %1976 = vmatprep.subr.mxu0 %v2370_v24 }
 0x3e0   : > { %1977 = vmatpush1.msra.mxu0 %v2369_v25 }
 0x479   : > { %v1594_v60 = vpop.f32.mrf.mxu0 }
 0x47a   : > { %v1605_v61 = vadd.f32 %v1594_v60, %v3456_v16 }
 0x47b   : > { %v1596_v62 = vpop.f32.mrf.mxu0 }
 0x47c   : > { %v1606_v26 = vadd.f32 %v1596_v62, %v3458_v19 }
 0x47d   : > { %v1600_v63 = vpop.f32.mrf.mxu0  ;;  %v1823_v9 = vpop.f32.mrf.mxu1 }
 0x47e   : > { %v1607_v0 = vadd.f32 %v1600_v63, %v3461_v22  ;;  %v1834_v16 = vadd.f32 %v1823_v9, %v1605_v61 }
 0x47f   : > { %v1602_v1 = vpop.f32.mrf.mxu0  ;;  %v1825_v12 = vpop.f32.mrf.mxu1 }
 0x480   : > { %v1608_v2 = vadd.f32 %v1602_v1, %v3463_v52  ;;  %v1835_v19 = vadd.f32 %v1825_v12, %v1606_v26 }
 0x481   : > { %v2493_v3 = vpop.f32.mrf.mxu0  ;;  %v1829_v44 = vpop.f32.mrf.mxu1 }
 0x482   : > { %v1836_v27 = vadd.f32 %v1829_v44, %v1607_v0 }
 0x483   : > { %v1904_v5 = vpop.f32.mrf.mxu0 }
 0x484   : > { %2011 = vmatmul.mubr.f32.vlgmr.msra.gmra.mxu0 %v1904_v5 }
 0x485   : > { %2016 = vmatprep.mubr.f32.mxu0 %v2513_v10  ;;  %v1831_v10 = vpop.f32.mrf.mxu1 }
 0x486   : > { %v1837_v29 = vadd.f32 %v1831_v10, %v1608_v2 }
 0x488   : > { %2017 = vmatmul.mubr.f32.gmra.mxu0 %v2493_v3 }
 0x544   : > { %v2012_v18 = vpop.f32.mrf.mxu0 }
 0x545   : > { %v2023_v20 = vadd.f32 %v2012_v18, %v1834_v16 }
 0x546   : > { %v2014_v22 = vpop.f32.mrf.mxu0 }
 0x547   : > { %v2039_v52 = vadd.f32 %v2032_v17, %v2023_v20  ;;  %v2024_v28 = vadd.f32 %v2014_v22, %v1835_v19 }
 0x548   : > { %v2018_v56 = vpop.f32.mrf.mxu0 }
 0x549   : > { %2043 = vst [vmem:[%s244_s29] sm:$0xff] %v2039_v52  ;;  %v2040_v58 = vadd.f32 %v2036_v21, %v2024_v28  ;;  %v2025_v59 = vadd.f32 %v2018_v56, %v1836_v27 }
 0x54a   : > { %v2020_v30 = vpop.f32.mrf.mxu0 }
 0x54b   : > { %2044 = vst [vmem:[%s244_s29 + $0x8] sm:$0xff] %v2040_v58  ;;  %v2041_v31 = vadd.f32 %v2032_v17, %v2025_v59  ;;  %v2026_v4 = vadd.f32 %v2020_v30, %v1837_v29 }
 0x54d   : > { %2045 = vst [vmem:[%s244_s29 + $0x10] sm:$0xff] %v2041_v31  ;;  %v2042_v32 = vadd.f32 %v2036_v21, %v2026_v4 }
 0x54f   : > { %2046 = vst [vmem:[%s244_s29 + $0x18] sm:$0xff] %v2042_v32 }
 0x550 PF: > { %s15_s18 = sadd.s32 1, %s2511_s18  }
 0x551   : > { %p12_p4 = scmp.ge.s32.totalorder %s15_s18, 4  }
 0x553   :  { %14 = sbr.rel (!%p12_p4) target bundleno = 1 (0x1), region = 83 }

</bundles_post_ra>
